<compile_context>
chip_gen: v7x
topology: tpu7x:2x2x1
jax: 0.10.0
libtpu: 0.0.40
codegen_flags: <defaults>
</compile_context>

<pallas_src>
import math
import functools

import jax
import jax.numpy as jnp
from jax.experimental import pallas as pl
from jax.experimental.pallas import tpu as pltpu


# -----------------------------------------------------------------------------
# Fused decoder-layer kernel (one grid step = one block of `bb` batch elements)
# -----------------------------------------------------------------------------
def _decoder_layer_kernel(*refs, bb, n_heads, d_k, d_v, has_enc_mask,
                          return_attn):
    it = iter(refs)
    dec_ref = next(it)                              # (bb, Tq, Dq) f32
    enc_ref = next(it)                              # (bb, Tk, Dk) f32
    sbias_ref = next(it)                            # (bb, Tq, Tq) f32 additive
    ebias_ref = next(it) if has_enc_mask else None  # (bb, Tq, Tk) f32 additive
    swq, swk, swv, swo = next(it), next(it), next(it), next(it)
    ewq, ewk, ewv, ewo = next(it), next(it), next(it), next(it)
    w1_ref, w2_ref = next(it), next(it)
    out_ref = next(it)                              # (bb, Tq, Dq)
    sattn_ref = next(it) if return_attn else None   # (bb, H, Tq, Tq)
    eattn_ref = next(it) if return_attn else None   # (bb, H, Tq, Tk)

    f32 = jnp.float32
    bf16 = jnp.bfloat16
    inv_sqrt_dk = 1.0 / math.sqrt(d_k)

    _, tq, dq = dec_ref.shape
    _, tk_e, dk_e = enc_ref.shape

    def layer_norm(y):
        # fresh nn.LayerNorm each forward => gamma=1, beta=0, eps=1e-5
        mu = jnp.mean(y, axis=-1, keepdims=True)
        var = jnp.mean((y - mu) ** 2, axis=-1, keepdims=True)
        return (y - mu) * jax.lax.rsqrt(var + 1e-5)

    def mha(x2d, kv2d, bias, tkv, wq_ref, wk_ref, wv_ref, wo_ref, attn_ref):
        # x2d: (bb*tq, Dq) f32, kv2d: (bb*tkv, Dkv) f32
        m = x2d.shape[0]
        xb = x2d.astype(bf16)
        kvb = xb if kv2d is x2d else kv2d.astype(bf16)

        # single-GEMM projections on the MXU: M = bb*tq rows, H*d lanes
        q = jnp.dot(xb, wq_ref[...], preferred_element_type=f32) * inv_sqrt_dk
        k = jnp.dot(kvb, wk_ref[...], preferred_element_type=f32)
        v = jnp.dot(kvb, wv_ref[...], preferred_element_type=f32)

        # cast once, split the (cheap) leading dim back out for batched attn
        qb = q.astype(bf16).reshape(bb, tq, n_heads * d_k)
        kb = k.astype(bf16).reshape(bb, tkv, n_heads * d_k)
        vb = v.astype(bf16).reshape(bb, tkv, n_heads * d_v)

        attn_heads = []
        ctx_heads = []
        for h in range(n_heads):                    # static unroll (H is small)
            qh = qb[:, :, h * d_k:(h + 1) * d_k]    # (bb, tq, d_k)
            kh = kb[:, :, h * d_k:(h + 1) * d_k]    # (bb, tkv, d_k)
            vh = vb[:, :, h * d_v:(h + 1) * d_v]    # (bb, tkv, d_v)

            s = jnp.einsum('bqd,bkd->bqk', qh, kh,
                           preferred_element_type=f32)      # (bb, tq, tkv)
            if bias is not None:                             # static branch
                s = s + bias

            # softmax in f32, exact normalization (probs are returned)
            mx = jnp.max(s, axis=-1, keepdims=True)
            e = jnp.exp(s - mx)
            a = e / jnp.sum(e, axis=-1, keepdims=True)
            attn_heads.append(a)

            ctx_heads.append(jnp.einsum('bqk,bkd->bqd', a.astype(bf16), vh,
                                        preferred_element_type=f32))

        if attn_ref is not None:
            attn_ref[...] = jnp.stack(attn_heads, axis=1)    # one store / block

        ctx = jnp.concatenate(ctx_heads, axis=-1)            # (bb, tq, H*d_v)
        ctx = ctx.reshape(m, n_heads * d_v)
        # single output-projection GEMM over all heads
        proj = jnp.dot(ctx.astype(bf16), wo_ref[...],
                       preferred_element_type=f32)           # (m, Dq)
        return layer_norm(proj + x2d)                        # residual + LN f32

    dec2d = dec_ref[...].reshape(bb * tq, dq)
    enc2d = enc_ref[...].reshape(bb * tk_e, dk_e)

    # 1) masked self-attention
    h1 = mha(dec2d, dec2d, sbias_ref[...], tq, swq, swk, swv, swo, sattn_ref)

    # 2) encoder-decoder attention (mask optional; elided statically if None)
    ebias = ebias_ref[...] if ebias_ref is not None else None
    h2 = mha(h1, enc2d, ebias, tk_e, ewq, ewk, ewv, ewo, eattn_ref)

    # 3) position-wise FFN
    hid = jnp.maximum(
        jnp.dot(h2.astype(bf16), w1_ref[...], preferred_element_type=f32), 0.0)
    ffn = jnp.dot(hid.astype(bf16), w2_ref[...], preferred_element_type=f32)
    out_ref[...] = layer_norm(ffn + h2).reshape(bb, tq, dq).astype(out_ref.dtype)


# -----------------------------------------------------------------------------
# DecoderLayer forward (wrapper)
# -----------------------------------------------------------------------------
def decoder_layer(params, dec_inputs, enc_outputs, dec_self_attn_mask,
                  dec_enc_attn_mask=None, *, n_heads, d_k, d_v,
                  block_batch=None, return_attn=True):
    B, Tq, Dq = dec_inputs.shape
    _, Tk, Dk = enc_outputs.shape
    d_ff = params["ffn_w1"].shape[1]
    has_enc_mask = dec_enc_attn_mask is not None

    f32 = jnp.float32
    bf16 = jnp.bfloat16

    # Fold batch elements into the compute block: one grid step handles bb
    # batch elements -> matmul M = bb*Tq rows and fewer grid-step overheads.
    if block_batch is None:
        bb = min(B, 16)
        while B % bb:
            bb -= 1
    else:
        bb = block_batch
        assert B % bb == 0, "block_batch must divide batch"
    grid = (B // bb,)

    # precomputed additive masks: replaces int32 compare+select in the kernel
    self_bias = jnp.where(dec_self_attn_mask != 0, -1e9, 0.0).astype(f32)

    inputs = [dec_inputs.astype(f32), enc_outputs.astype(f32), self_bias]
    in_specs = [
        pl.BlockSpec((bb, Tq, Dq), lambda b: (b, 0, 0)),
        pl.BlockSpec((bb, Tk, Dk), lambda b: (b, 0, 0)),
        pl.BlockSpec((bb, Tq, Tq), lambda b: (b, 0, 0)),
    ]
    if has_enc_mask:
        enc_bias = jnp.where(dec_enc_attn_mask != 0, -1e9, 0.0).astype(f32)
        inputs.append(enc_bias)
        in_specs.append(pl.BlockSpec((bb, Tq, Tk), lambda b: (b, 0, 0)))

    # weights stay in the module's concatenated-head layout; bf16 for the MXU
    weights = [
        params["self_wq"].astype(bf16), params["self_wk"].astype(bf16),
        params["self_wv"].astype(bf16), params["self_wo"].astype(bf16),
        params["enc_wq"].astype(bf16), params["enc_wk"].astype(bf16),
        params["enc_wv"].astype(bf16), params["enc_wo"].astype(bf16),
        params["ffn_w1"].astype(bf16), params["ffn_w2"].astype(bf16),
    ]
    weight_specs = [pl.BlockSpec(w.shape, lambda b: (0, 0)) for w in weights]

    inputs += weights
    in_specs += weight_specs

    out_shapes = [jax.ShapeDtypeStruct((B, Tq, Dq), f32)]
    out_specs = [pl.BlockSpec((bb, Tq, Dq), lambda b: (b, 0, 0))]
    if return_attn:
        out_shapes += [jax.ShapeDtypeStruct((B, n_heads, Tq, Tq), f32),
                       jax.ShapeDtypeStruct((B, n_heads, Tq, Tk), f32)]
        out_specs += [pl.BlockSpec((bb, n_heads, Tq, Tq), lambda b: (b, 0, 0, 0)),
                      pl.BlockSpec((bb, n_heads, Tq, Tk), lambda b: (b, 0, 0, 0))]

    kernel = functools.partial(
        _decoder_layer_kernel, bb=bb, n_heads=n_heads, d_k=d_k, d_v=d_v,
        has_enc_mask=has_enc_mask, return_attn=return_attn)

    outs = pl.pallas_call(
        kernel,
        out_shape=tuple(out_shapes),
        grid_spec=pltpu.PrefetchScalarGridSpec(
            num_scalar_prefetch=0,
            grid=grid,
            in_specs=in_specs,
            out_specs=tuple(out_specs),
        ),
        compiler_params=pltpu.CompilerParams(
            dimension_semantics=("parallel",)),   # batch blocks across TCs (v7x)
    )(*inputs)

    if return_attn:
        return outs
    return outs[0], None, None


# -----------------------------------------------------------------------------
# Pure-JAX f32 reference (for a loose numerical check)
# -----------------------------------------------------------------------------
def reference_decoder_layer(params, dec, enc, smask, emask, *, n_heads, d_k, d_v):
    def ln(y):
        mu = y.mean(-1, keepdims=True)
        var = ((y - mu) ** 2).mean(-1, keepdims=True)
        return (y - mu) / jnp.sqrt(var + 1e-5)

    def mha(x, kv, mask, wq, wk, wv, wo):
        B, Tq, _ = x.shape
        Tk = kv.shape[1]
        q = (x @ wq).reshape(B, Tq, n_heads, d_k).transpose(0, 2, 1, 3)
        k = (kv @ wk).reshape(B, Tk, n_heads, d_k).transpose(0, 2, 1, 3)
        v = (kv @ wv).reshape(B, Tk, n_heads, d_v).transpose(0, 2, 1, 3)
        scores = jnp.einsum('bhqd,bhkd->bhqk', q, k) / math.sqrt(d_k)
        if mask is not None:
            scores = jnp.where(mask[:, None] != 0, -1e9, scores)
        attn = jax.nn.softmax(scores, axis=-1)
        ctx = jnp.einsum('bhqk,bhkd->bhqd', attn, v)
        ctx = ctx.transpose(0, 2, 1, 3).reshape(B, Tq, n_heads * d_v)
        return ln(ctx @ wo + x), attn

    h1, sa = mha(dec, dec, smask, params["self_wq"], params["self_wk"],
                 params["self_wv"], params["self_wo"])
    h2, ea = mha(h1, enc, emask, params["enc_wq"], params["enc_wk"],
                 params["enc_wv"], params["enc_wo"])
    f = jnp.maximum(h2 @ params["ffn_w1"], 0.0) @ params["ffn_w2"]
    return ln(f + h2), sa, ea


# -----------------------------------------------------------------------------
# Parameter init + demo
# -----------------------------------------------------------------------------
def init_params(key, Q_size, K_size, n_heads, d_k, d_v, d_ff):
    ks = jax.random.split(key, 10)
    s = 0.05
    return {
        "self_wq": s * jax.random.normal(ks[0], (Q_size, n_heads * d_k), jnp.float32),
        "self_wk": s * jax.random.normal(ks[1], (Q_size, n_heads * d_k), jnp.float32),
        "self_wv": s * jax.random.normal(ks[2], (Q_size, n_heads * d_v), jnp.float32),
        "self_wo": s * jax.random.normal(ks[3], (n_heads * d_v, Q_size), jnp.float32),
        "enc_wq": s * jax.random.normal(ks[4], (Q_size, n_heads * d_k), jnp.float32),
        "enc_wk": s * jax.random.normal(ks[5], (K_size, n_heads * d_k), jnp.float32),
        "enc_wv": s * jax.random.normal(ks[6], (K_size, n_heads * d_v), jnp.float32),
        "enc_wo": s * jax.random.normal(ks[7], (n_heads * d_v, Q_size), jnp.float32),
        "ffn_w1": s * jax.random.normal(ks[8], (Q_size, d_ff), jnp.float32),
        "ffn_w2": s * jax.random.normal(ks[9], (d_ff, Q_size), jnp.float32),
    }


if __name__ == "__main__":
    # small, module-consistent shapes
    B, Tq, Tk = 2, 8, 10
    Q_size, K_size = 32, 48        # decoder / encoder hidden sizes
    d_k = d_v = 16                 # args.aemb
    n_heads = 2                    # args.speaker_head_num
    d_ff = 64                      # args.proj_hidden

    key = jax.random.PRNGKey(0)
    k_p, k_dec, k_enc = jax.random.split(key, 3)

    params = init_params(k_p, Q_size, K_size, n_heads, d_k, d_v, d_ff)

    dec_inputs = jax.random.normal(k_dec, (B, Tq, Q_size), jnp.float32)
    enc_outputs = jax.random.normal(k_enc, (B, Tk, K_size), jnp.float32)

    # causal self-attention mask: nonzero => masked
    causal = jnp.triu(jnp.ones((Tq, Tq), dtype=jnp.int32), k=1)
    dec_self_attn_mask = jnp.broadcast_to(causal[None], (B, Tq, Tq))

    fwd = jax.jit(functools.partial(decoder_layer, n_heads=n_heads, d_k=d_k, d_v=d_v))
    dec_out, self_attn, enc_attn = fwd(params, dec_inputs, enc_outputs,
                                       dec_self_attn_mask, None)
    jax.block_until_ready((dec_out, self_attn, enc_attn))

    assert dec_out.shape == (B, Tq, Q_size)
    assert self_attn.shape == (B, n_heads, Tq, Tq)
    assert enc_attn.shape == (B, n_heads, Tq, Tk)

    # loose check vs f32 pure-JAX reference (kernel matmuls are bf16 on the MXU)
    ref_out, ref_sa, ref_ea = reference_decoder_layer(
        params, dec_inputs, enc_outputs, dec_self_attn_mask, None,
        n_heads=n_heads, d_k=d_k, d_v=d_v)
    err_out = float(jnp.max(jnp.abs(dec_out - ref_out)))
    err_sa = float(jnp.max(jnp.abs(self_attn - ref_sa)))
    err_ea = float(jnp.max(jnp.abs(enc_attn - ref_ea)))
    assert err_out < 1e-1 and err_sa < 3e-2 and err_ea < 3e-2, (err_out, err_sa, err_ea)

    print("KERNEL_OK")
</pallas_src>

<mosaic_0001>
module attributes {stable_mosaic.version = 11 : i64} {
  func.func @_decoder_layer_kernel(%arg0: i32, %arg1: memref<2x8x32xf32, #tpu.memory_space<vmem>>, %arg2: memref<2x10x48xf32, #tpu.memory_space<vmem>>, %arg3: memref<2x8x8xf32, #tpu.memory_space<vmem>>, %arg4: memref<32x32xbf16, #tpu.memory_space<vmem>>, %arg5: memref<32x32xbf16, #tpu.memory_space<vmem>>, %arg6: memref<32x32xbf16, #tpu.memory_space<vmem>>, %arg7: memref<32x32xbf16, #tpu.memory_space<vmem>>, %arg8: memref<32x32xbf16, #tpu.memory_space<vmem>>, %arg9: memref<48x32xbf16, #tpu.memory_space<vmem>>, %arg10: memref<48x32xbf16, #tpu.memory_space<vmem>>, %arg11: memref<32x32xbf16, #tpu.memory_space<vmem>>, %arg12: memref<32x64xbf16, #tpu.memory_space<vmem>>, %arg13: memref<64x32xbf16, #tpu.memory_space<vmem>>, %arg14: memref<2x8x32xf32, #tpu.memory_space<vmem>>, %arg15: memref<2x2x8x8xf32, #tpu.memory_space<vmem>>, %arg16: memref<2x2x8x10xf32, #tpu.memory_space<vmem>>) attributes {dimension_semantics = [#tpu.dimension_semantics<parallel>], iteration_bounds = array<i64: 1>, scalar_prefetch = 0 : i64, scratch_operands = 0 : i64, tpu.core_type = #tpu.core_type<tc>, window_params = [{transform_indices = @transform_0, window_bounds = array<i64: 2, 8, 32>}, {transform_indices = @transform_1, window_bounds = array<i64: 2, 10, 48>}, {transform_indices = @transform_2, window_bounds = array<i64: 2, 8, 8>}, {pipeline_mode = #tpu.pipeline_mode<synchronous>, transform_indices = @transform_3, window_bounds = array<i64: 32, 32>}, {pipeline_mode = #tpu.pipeline_mode<synchronous>, transform_indices = @transform_4, window_bounds = array<i64: 32, 32>}, {pipeline_mode = #tpu.pipeline_mode<synchronous>, transform_indices = @transform_5, window_bounds = array<i64: 32, 32>}, {pipeline_mode = #tpu.pipeline_mode<synchronous>, transform_indices = @transform_6, window_bounds = array<i64: 32, 32>}, {pipeline_mode = #tpu.pipeline_mode<synchronous>, transform_indices = @transform_7, window_bounds = array<i64: 32, 32>}, {pipeline_mode = #tpu.pipeline_mode<synchronous>, transform_indices = @transform_8, window_bounds = array<i64: 48, 32>}, {pipeline_mode = #tpu.pipeline_mode<synchronous>, transform_indices = @transform_9, window_bounds = array<i64: 48, 32>}, {pipeline_mode = #tpu.pipeline_mode<synchronous>, transform_indices = @transform_10, window_bounds = array<i64: 32, 32>}, {pipeline_mode = #tpu.pipeline_mode<synchronous>, transform_indices = @transform_11, window_bounds = array<i64: 32, 64>}, {pipeline_mode = #tpu.pipeline_mode<synchronous>, transform_indices = @transform_12, window_bounds = array<i64: 64, 32>}, {transform_indices = @transform_13, window_bounds = array<i64: 2, 8, 32>}, {transform_indices = @transform_14, window_bounds = array<i64: 2, 2, 8, 8>}, {transform_indices = @transform_15, window_bounds = array<i64: 2, 2, 8, 10>}]} {
    %c0 = arith.constant 0 : index
    %c0_0 = arith.constant 0 : index
    %c0_1 = arith.constant 0 : index
    %0 = vector.load %arg1[%c0, %c0_0, %c0_1] : memref<2x8x32xf32, #tpu.memory_space<vmem>>, vector<2x8x32xf32>
    %1 = vector.shape_cast %0 : vector<2x8x32xf32> to vector<16x32xf32>
    %c0_2 = arith.constant 0 : index
    %c0_3 = arith.constant 0 : index
    %c0_4 = arith.constant 0 : index
    %2 = vector.load %arg2[%c0_2, %c0_3, %c0_4] : memref<2x10x48xf32, #tpu.memory_space<vmem>>, vector<2x10x48xf32>
    %3 = vector.shape_cast %2 : vector<2x10x48xf32> to vector<20x48xf32>
    %c0_5 = arith.constant 0 : index
    %c0_6 = arith.constant 0 : index
    %c0_7 = arith.constant 0 : index
    %4 = vector.load %arg3[%c0_5, %c0_6, %c0_7] : memref<2x8x8xf32, #tpu.memory_space<vmem>>, vector<2x8x8xf32>
    %5 = arith.truncf %1 : vector<16x32xf32> to vector<16x32xbf16>
    %c0_8 = arith.constant 0 : index
    %c0_9 = arith.constant 0 : index
    %6 = vector.load %arg4[%c0_8, %c0_9] : memref<32x32xbf16, #tpu.memory_space<vmem>>, vector<32x32xbf16>
    %cst = arith.constant dense<0.000000e+00> : vector<16x32xf32>
    %7 = tpu.matmul %5, %6, %cst {dimension_numbers = #tpu.dot_dimension_numbers<[1], [0], [0], [1], [0, 0, 1, 1], [], []>} : vector<16x32xbf16>, vector<32x32xbf16>, vector<16x32xf32> -> vector<16x32xf32>
    %cst_10 = arith.constant 2.500000e-01 : f32
    %8 = vector.broadcast %cst_10 : f32 to vector<16x32xf32>
    %9 = arith.mulf %7, %8 : vector<16x32xf32>
    %c0_11 = arith.constant 0 : index
    %c0_12 = arith.constant 0 : index
    %10 = vector.load %arg5[%c0_11, %c0_12] : memref<32x32xbf16, #tpu.memory_space<vmem>>, vector<32x32xbf16>
    %cst_13 = arith.constant dense<0.000000e+00> : vector<16x32xf32>
    %11 = tpu.matmul %5, %10, %cst_13 {dimension_numbers = #tpu.dot_dimension_numbers<[1], [0], [0], [1], [0, 0, 1, 1], [], []>} : vector<16x32xbf16>, vector<32x32xbf16>, vector<16x32xf32> -> vector<16x32xf32>
    %c0_14 = arith.constant 0 : index
    %c0_15 = arith.constant 0 : index
    %12 = vector.load %arg6[%c0_14, %c0_15] : memref<32x32xbf16, #tpu.memory_space<vmem>>, vector<32x32xbf16>
    %cst_16 = arith.constant dense<0.000000e+00> : vector<16x32xf32>
    %13 = tpu.matmul %5, %12, %cst_16 {dimension_numbers = #tpu.dot_dimension_numbers<[1], [0], [0], [1], [0, 0, 1, 1], [], []>} : vector<16x32xbf16>, vector<32x32xbf16>, vector<16x32xf32> -> vector<16x32xf32>
    %14 = arith.truncf %9 : vector<16x32xf32> to vector<16x32xbf16>
    %15 = vector.shape_cast %14 : vector<16x32xbf16> to vector<2x8x32xbf16>
    %16 = arith.truncf %11 : vector<16x32xf32> to vector<16x32xbf16>
    %17 = vector.shape_cast %16 : vector<16x32xbf16> to vector<2x8x32xbf16>
    %18 = arith.truncf %13 : vector<16x32xf32> to vector<16x32xbf16>
    %19 = vector.shape_cast %18 : vector<16x32xbf16> to vector<2x8x32xbf16>
    %20 = vector.extract_strided_slice %15 {offsets = [0, 0, 0], sizes = [2, 8, 16], strides = [1, 1, 1]} : vector<2x8x32xbf16> to vector<2x8x16xbf16>
    %21 = vector.extract_strided_slice %17 {offsets = [0, 0, 0], sizes = [2, 8, 16], strides = [1, 1, 1]} : vector<2x8x32xbf16> to vector<2x8x16xbf16>
    %22 = vector.extract_strided_slice %19 {offsets = [0, 0, 0], sizes = [2, 8, 16], strides = [1, 1, 1]} : vector<2x8x32xbf16> to vector<2x8x16xbf16>
    "tpu.trace_start"() <{level = 10 : i32, message = "bqd,bkd->bqk"}> : () -> ()
    %cst_17 = arith.constant dense<0.000000e+00> : vector<2x8x8xf32>
    %23 = tpu.matmul %20, %21, %cst_17 {dimension_numbers = #tpu.dot_dimension_numbers<[2], [2], [1], [1], [0, 0, 0, 1, 1, 1], [0], [0]>} : vector<2x8x16xbf16>, vector<2x8x16xbf16>, vector<2x8x8xf32> -> vector<2x8x8xf32>
    "tpu.trace_stop"() : () -> ()
    %24 = arith.addf %23, %4 : vector<2x8x8xf32>
    %cst_18 = arith.constant dense<0xFF800000> : vector<2x8xf32>
    %25 = vector.multi_reduction <maximumf>, %24, %cst_18 [2] : vector<2x8x8xf32> to vector<2x8xf32>
    %26 = vector.shape_cast %25 : vector<2x8xf32> to vector<2x8x1xf32>
    %27 = vector.broadcast %26 : vector<2x8x1xf32> to vector<2x8x8xf32>
    %28 = arith.subf %24, %27 : vector<2x8x8xf32>
    %29 = math.exp %28 : vector<2x8x8xf32>
    %cst_19 = arith.constant dense<0.000000e+00> : vector<2x8xf32>
    %30 = vector.multi_reduction <add>, %29, %cst_19 [2] : vector<2x8x8xf32> to vector<2x8xf32>
    %31 = vector.shape_cast %30 : vector<2x8xf32> to vector<2x8x1xf32>
    %32 = vector.broadcast %31 : vector<2x8x1xf32> to vector<2x8x8xf32>
    %33 = arith.divf %29, %32 : vector<2x8x8xf32>
    %34 = arith.truncf %33 : vector<2x8x8xf32> to vector<2x8x8xbf16>
    "tpu.trace_start"() <{level = 10 : i32, message = "bqk,bkd->bqd"}> : () -> ()
    %cst_20 = arith.constant dense<0.000000e+00> : vector<2x8x16xf32>
    %35 = tpu.matmul %34, %22, %cst_20 {dimension_numbers = #tpu.dot_dimension_numbers<[2], [1], [1], [2], [0, 0, 0, 1, 1, 2], [0], [0]>} : vector<2x8x8xbf16>, vector<2x8x16xbf16>, vector<2x8x16xf32> -> vector<2x8x16xf32>
    "tpu.trace_stop"() : () -> ()
    %36 = vector.extract_strided_slice %15 {offsets = [0, 0, 16], sizes = [2, 8, 16], strides = [1, 1, 1]} : vector<2x8x32xbf16> to vector<2x8x16xbf16>
    %37 = vector.extract_strided_slice %17 {offsets = [0, 0, 16], sizes = [2, 8, 16], strides = [1, 1, 1]} : vector<2x8x32xbf16> to vector<2x8x16xbf16>
    %38 = vector.extract_strided_slice %19 {offsets = [0, 0, 16], sizes = [2, 8, 16], strides = [1, 1, 1]} : vector<2x8x32xbf16> to vector<2x8x16xbf16>
    "tpu.trace_start"() <{level = 10 : i32, message = "bqd,bkd->bqk"}> : () -> ()
    %cst_21 = arith.constant dense<0.000000e+00> : vector<2x8x8xf32>
    %39 = tpu.matmul %36, %37, %cst_21 {dimension_numbers = #tpu.dot_dimension_numbers<[2], [2], [1], [1], [0, 0, 0, 1, 1, 1], [0], [0]>} : vector<2x8x16xbf16>, vector<2x8x16xbf16>, vector<2x8x8xf32> -> vector<2x8x8xf32>
    "tpu.trace_stop"() : () -> ()
    %40 = arith.addf %39, %4 : vector<2x8x8xf32>
    %cst_22 = arith.constant dense<0xFF800000> : vector<2x8xf32>
    %41 = vector.multi_reduction <maximumf>, %40, %cst_22 [2] : vector<2x8x8xf32> to vector<2x8xf32>
    %42 = vector.shape_cast %41 : vector<2x8xf32> to vector<2x8x1xf32>
    %43 = vector.broadcast %42 : vector<2x8x1xf32> to vector<2x8x8xf32>
    %44 = arith.subf %40, %43 : vector<2x8x8xf32>
    %45 = math.exp %44 : vector<2x8x8xf32>
    %cst_23 = arith.constant dense<0.000000e+00> : vector<2x8xf32>
    %46 = vector.multi_reduction <add>, %45, %cst_23 [2] : vector<2x8x8xf32> to vector<2x8xf32>
    %47 = vector.shape_cast %46 : vector<2x8xf32> to vector<2x8x1xf32>
    %48 = vector.broadcast %47 : vector<2x8x1xf32> to vector<2x8x8xf32>
    %49 = arith.divf %45, %48 : vector<2x8x8xf32>
    %50 = arith.truncf %49 : vector<2x8x8xf32> to vector<2x8x8xbf16>
    "tpu.trace_start"() <{level = 10 : i32, message = "bqk,bkd->bqd"}> : () -> ()
    %cst_24 = arith.constant dense<0.000000e+00> : vector<2x8x16xf32>
    %51 = tpu.matmul %50, %38, %cst_24 {dimension_numbers = #tpu.dot_dimension_numbers<[2], [1], [1], [2], [0, 0, 0, 1, 1, 2], [0], [0]>} : vector<2x8x8xbf16>, vector<2x8x16xbf16>, vector<2x8x16xf32> -> vector<2x8x16xf32>
    "tpu.trace_stop"() : () -> ()
    %52 = vector.shape_cast %33 : vector<2x8x8xf32> to vector<2x1x8x8xf32>
    %53 = vector.shape_cast %49 : vector<2x8x8xf32> to vector<2x1x8x8xf32>
    %54 = tpu.concatenate %52, %53 in 1 : vector<2x1x8x8xf32>, vector<2x1x8x8xf32> -> vector<2x2x8x8xf32>
    %c0_25 = arith.constant 0 : index
    %c0_26 = arith.constant 0 : index
    %c0_27 = arith.constant 0 : index
    %c0_28 = arith.constant 0 : index
    %55 = vector.load %arg15[%c0_25, %c0_26, %c0_27, %c0_28] : memref<2x2x8x8xf32, #tpu.memory_space<vmem>>, vector<2x2x8x8xf32>
    tpu.vector_store %arg15[%c0_25, %c0_26, %c0_27, %c0_28], %54 {strides = array<i32>} : memref<2x2x8x8xf32, #tpu.memory_space<vmem>>, vector<2x2x8x8xf32>,
    %56 = tpu.concatenate %35, %51 in 2 : vector<2x8x16xf32>, vector<2x8x16xf32> -> vector<2x8x32xf32>
    %57 = vector.shape_cast %56 : vector<2x8x32xf32> to vector<16x32xf32>
    %58 = arith.truncf %57 : vector<16x32xf32> to vector<16x32xbf16>
    %c0_29 = arith.constant 0 : index
    %c0_30 = arith.constant 0 : index
    %59 = vector.load %arg7[%c0_29, %c0_30] : memref<32x32xbf16, #tpu.memory_space<vmem>>, vector<32x32xbf16>
    %cst_31 = arith.constant dense<0.000000e+00> : vector<16x32xf32>
    %60 = tpu.matmul %58, %59, %cst_31 {dimension_numbers = #tpu.dot_dimension_numbers<[1], [0], [0], [1], [0, 0, 1, 1], [], []>} : vector<16x32xbf16>, vector<32x32xbf16>, vector<16x32xf32> -> vector<16x32xf32>
    %61 = arith.addf %60, %1 : vector<16x32xf32>
    %cst_32 = arith.constant dense<0.000000e+00> : vector<16xf32>
    %62 = vector.multi_reduction <add>, %61, %cst_32 [1] : vector<16x32xf32> to vector<16xf32>
    %63 = vector.shape_cast %62 : vector<16xf32> to vector<16x1xf32>
    %cst_33 = arith.constant 3.200000e+01 : f32
    %64 = vector.broadcast %cst_33 : f32 to vector<16x1xf32>
    %65 = arith.divf %63, %64 : vector<16x1xf32>
    %66 = vector.broadcast %65 : vector<16x1xf32> to vector<16x32xf32>
    %67 = arith.subf %61, %66 : vector<16x32xf32>
    %68 = arith.mulf %67, %67 : vector<16x32xf32>
    %cst_34 = arith.constant dense<0.000000e+00> : vector<16xf32>
    %69 = vector.multi_reduction <add>, %68, %cst_34 [1] : vector<16x32xf32> to vector<16xf32>
    %70 = vector.shape_cast %69 : vector<16xf32> to vector<16x1xf32>
    %cst_35 = arith.constant 3.200000e+01 : f32
    %71 = vector.broadcast %cst_35 : f32 to vector<16x1xf32>
    %72 = arith.divf %70, %71 : vector<16x1xf32>
    %73 = vector.broadcast %65 : vector<16x1xf32> to vector<16x32xf32>
    %74 = arith.subf %61, %73 : vector<16x32xf32>
    %cst_36 = arith.constant 9.99999974E-6 : f32
    %75 = vector.broadcast %cst_36 : f32 to vector<16x1xf32>
    %76 = arith.addf %72, %75 : vector<16x1xf32>
    %77 = math.rsqrt %76 : vector<16x1xf32>
    %78 = vector.broadcast %77 : vector<16x1xf32> to vector<16x32xf32>
    %79 = arith.mulf %74, %78 : vector<16x32xf32>
    %80 = arith.truncf %79 : vector<16x32xf32> to vector<16x32xbf16>
    %81 = arith.truncf %3 : vector<20x48xf32> to vector<20x48xbf16>
    %c0_37 = arith.constant 0 : index
    %c0_38 = arith.constant 0 : index
    %82 = vector.load %arg8[%c0_37, %c0_38] : memref<32x32xbf16, #tpu.memory_space<vmem>>, vector<32x32xbf16>
    %cst_39 = arith.constant dense<0.000000e+00> : vector<16x32xf32>
    %83 = tpu.matmul %80, %82, %cst_39 {dimension_numbers = #tpu.dot_dimension_numbers<[1], [0], [0], [1], [0, 0, 1, 1], [], []>} : vector<16x32xbf16>, vector<32x32xbf16>, vector<16x32xf32> -> vector<16x32xf32>
    %cst_40 = arith.constant 2.500000e-01 : f32
    %84 = vector.broadcast %cst_40 : f32 to vector<16x32xf32>
    %85 = arith.mulf %83, %84 : vector<16x32xf32>
    %c0_41 = arith.constant 0 : index
    %c0_42 = arith.constant 0 : index
    %86 = vector.load %arg9[%c0_41, %c0_42] : memref<48x32xbf16, #tpu.memory_space<vmem>>, vector<48x32xbf16>
    %cst_43 = arith.constant dense<0.000000e+00> : vector<20x32xf32>
    %87 = tpu.matmul %81, %86, %cst_43 {dimension_numbers = #tpu.dot_dimension_numbers<[1], [0], [0], [1], [0, 0, 1, 1], [], []>} : vector<20x48xbf16>, vector<48x32xbf16>, vector<20x32xf32> -> vector<20x32xf32>
    %c0_44 = arith.constant 0 : index
    %c0_45 = arith.constant 0 : index
    %88 = vector.load %arg10[%c0_44, %c0_45] : memref<48x32xbf16, #tpu.memory_space<vmem>>, vector<48x32xbf16>
    %cst_46 = arith.constant dense<0.000000e+00> : vector<20x32xf32>
    %89 = tpu.matmul %81, %88, %cst_46 {dimension_numbers = #tpu.dot_dimension_numbers<[1], [0], [0], [1], [0, 0, 1, 1], [], []>} : vector<20x48xbf16>, vector<48x32xbf16>, vector<20x32xf32> -> vector<20x32xf32>
    %90 = arith.truncf %85 : vector<16x32xf32> to vector<16x32xbf16>
    %91 = vector.shape_cast %90 : vector<16x32xbf16> to vector<2x8x32xbf16>
    %92 = arith.truncf %87 : vector<20x32xf32> to vector<20x32xbf16>
    %93 = vector.shape_cast %92 : vector<20x32xbf16> to vector<2x10x32xbf16>
    %94 = arith.truncf %89 : vector<20x32xf32> to vector<20x32xbf16>
    %95 = vector.shape_cast %94 : vector<20x32xbf16> to vector<2x10x32xbf16>
    %96 = vector.extract_strided_slice %91 {offsets = [0, 0, 0], sizes = [2, 8, 16], strides = [1, 1, 1]} : vector<2x8x32xbf16> to vector<2x8x16xbf16>
    %97 = vector.extract_strided_slice %93 {offsets = [0, 0, 0], sizes = [2, 10, 16], strides = [1, 1, 1]} : vector<2x10x32xbf16> to vector<2x10x16xbf16>
    %98 = vector.extract_strided_slice %95 {offsets = [0, 0, 0], sizes = [2, 10, 16], strides = [1, 1, 1]} : vector<2x10x32xbf16> to vector<2x10x16xbf16>
    "tpu.trace_start"() <{level = 10 : i32, message = "bqd,bkd->bqk"}> : () -> ()
    %cst_47 = arith.constant dense<0.000000e+00> : vector<2x8x10xf32>
    %99 = tpu.matmul %96, %97, %cst_47 {dimension_numbers = #tpu.dot_dimension_numbers<[2], [2], [1], [1], [0, 0, 0, 1, 1, 1], [0], [0]>} : vector<2x8x16xbf16>, vector<2x10x16xbf16>, vector<2x8x10xf32> -> vector<2x8x10xf32>
    "tpu.trace_stop"() : () -> ()
    %cst_48 = arith.constant dense<0xFF800000> : vector<2x8xf32>
    %100 = vector.multi_reduction <maximumf>, %99, %cst_48 [2] : vector<2x8x10xf32> to vector<2x8xf32>
    %101 = vector.shape_cast %100 : vector<2x8xf32> to vector<2x8x1xf32>
    %102 = vector.broadcast %101 : vector<2x8x1xf32> to vector<2x8x10xf32>
    %103 = arith.subf %99, %102 : vector<2x8x10xf32>
    %104 = math.exp %103 : vector<2x8x10xf32>
    %cst_49 = arith.constant dense<0.000000e+00> : vector<2x8xf32>
    %105 = vector.multi_reduction <add>, %104, %cst_49 [2] : vector<2x8x10xf32> to vector<2x8xf32>
    %106 = vector.shape_cast %105 : vector<2x8xf32> to vector<2x8x1xf32>
    %107 = vector.broadcast %106 : vector<2x8x1xf32> to vector<2x8x10xf32>
    %108 = arith.divf %104, %107 : vector<2x8x10xf32>
    %109 = arith.truncf %108 : vector<2x8x10xf32> to vector<2x8x10xbf16>
    "tpu.trace_start"() <{level = 10 : i32, message = "bqk,bkd->bqd"}> : () -> ()
    %cst_50 = arith.constant dense<0.000000e+00> : vector<2x8x16xf32>
    %110 = tpu.matmul %109, %98, %cst_50 {dimension_numbers = #tpu.dot_dimension_numbers<[2], [1], [1], [2], [0, 0, 0, 1, 1, 2], [0], [0]>} : vector<2x8x10xbf16>, vector<2x10x16xbf16>, vector<2x8x16xf32> -> vector<2x8x16xf32>
    "tpu.trace_stop"() : () -> ()
    %111 = vector.extract_strided_slice %91 {offsets = [0, 0, 16], sizes = [2, 8, 16], strides = [1, 1, 1]} : vector<2x8x32xbf16> to vector<2x8x16xbf16>
    %112 = vector.extract_strided_slice %93 {offsets = [0, 0, 16], sizes = [2, 10, 16], strides = [1, 1, 1]} : vector<2x10x32xbf16> to vector<2x10x16xbf16>
    %113 = vector.extract_strided_slice %95 {offsets = [0, 0, 16], sizes = [2, 10, 16], strides = [1, 1, 1]} : vector<2x10x32xbf16> to vector<2x10x16xbf16>
    "tpu.trace_start"() <{level = 10 : i32, message = "bqd,bkd->bqk"}> : () -> ()
    %cst_51 = arith.constant dense<0.000000e+00> : vector<2x8x10xf32>
    %114 = tpu.matmul %111, %112, %cst_51 {dimension_numbers = #tpu.dot_dimension_numbers<[2], [2], [1], [1], [0, 0, 0, 1, 1, 1], [0], [0]>} : vector<2x8x16xbf16>, vector<2x10x16xbf16>, vector<2x8x10xf32> -> vector<2x8x10xf32>
    "tpu.trace_stop"() : () -> ()
    %cst_52 = arith.constant dense<0xFF800000> : vector<2x8xf32>
    %115 = vector.multi_reduction <maximumf>, %114, %cst_52 [2] : vector<2x8x10xf32> to vector<2x8xf32>
    %116 = vector.shape_cast %115 : vector<2x8xf32> to vector<2x8x1xf32>
    %117 = vector.broadcast %116 : vector<2x8x1xf32> to vector<2x8x10xf32>
    %118 = arith.subf %114, %117 : vector<2x8x10xf32>
    %119 = math.exp %118 : vector<2x8x10xf32>
    %cst_53 = arith.constant dense<0.000000e+00> : vector<2x8xf32>
    %120 = vector.multi_reduction <add>, %119, %cst_53 [2] : vector<2x8x10xf32> to vector<2x8xf32>
    %121 = vector.shape_cast %120 : vector<2x8xf32> to vector<2x8x1xf32>
    %122 = vector.broadcast %121 : vector<2x8x1xf32> to vector<2x8x10xf32>
    %123 = arith.divf %119, %122 : vector<2x8x10xf32>
    %124 = arith.truncf %123 : vector<2x8x10xf32> to vector<2x8x10xbf16>
    "tpu.trace_start"() <{level = 10 : i32, message = "bqk,bkd->bqd"}> : () -> ()
    %cst_54 = arith.constant dense<0.000000e+00> : vector<2x8x16xf32>
    %125 = tpu.matmul %124, %113, %cst_54 {dimension_numbers = #tpu.dot_dimension_numbers<[2], [1], [1], [2], [0, 0, 0, 1, 1, 2], [0], [0]>} : vector<2x8x10xbf16>, vector<2x10x16xbf16>, vector<2x8x16xf32> -> vector<2x8x16xf32>
    "tpu.trace_stop"() : () -> ()
    %126 = vector.shape_cast %108 : vector<2x8x10xf32> to vector<2x1x8x10xf32>
    %127 = vector.shape_cast %123 : vector<2x8x10xf32> to vector<2x1x8x10xf32>
    %128 = tpu.concatenate %126, %127 in 1 : vector<2x1x8x10xf32>, vector<2x1x8x10xf32> -> vector<2x2x8x10xf32>
    %c0_55 = arith.constant 0 : index
    %c0_56 = arith.constant 0 : index
    %c0_57 = arith.constant 0 : index
    %c0_58 = arith.constant 0 : index
    %129 = vector.load %arg16[%c0_55, %c0_56, %c0_57, %c0_58] : memref<2x2x8x10xf32, #tpu.memory_space<vmem>>, vector<2x2x8x10xf32>
    tpu.vector_store %arg16[%c0_55, %c0_56, %c0_57, %c0_58], %128 {strides = array<i32>} : memref<2x2x8x10xf32, #tpu.memory_space<vmem>>, vector<2x2x8x10xf32>,
    %130 = tpu.concatenate %110, %125 in 2 : vector<2x8x16xf32>, vector<2x8x16xf32> -> vector<2x8x32xf32>
    %131 = vector.shape_cast %130 : vector<2x8x32xf32> to vector<16x32xf32>
    %132 = arith.truncf %131 : vector<16x32xf32> to vector<16x32xbf16>
    %c0_59 = arith.constant 0 : index
    %c0_60 = arith.constant 0 : index
    %133 = vector.load %arg11[%c0_59, %c0_60] : memref<32x32xbf16, #tpu.memory_space<vmem>>, vector<32x32xbf16>
    %cst_61 = arith.constant dense<0.000000e+00> : vector<16x32xf32>
    %134 = tpu.matmul %132, %133, %cst_61 {dimension_numbers = #tpu.dot_dimension_numbers<[1], [0], [0], [1], [0, 0, 1, 1], [], []>} : vector<16x32xbf16>, vector<32x32xbf16>, vector<16x32xf32> -> vector<16x32xf32>
    %135 = arith.addf %134, %79 : vector<16x32xf32>
    %cst_62 = arith.constant dense<0.000000e+00> : vector<16xf32>
    %136 = vector.multi_reduction <add>, %135, %cst_62 [1] : vector<16x32xf32> to vector<16xf32>
    %137 = vector.shape_cast %136 : vector<16xf32> to vector<16x1xf32>
    %cst_63 = arith.constant 3.200000e+01 : f32
    %138 = vector.broadcast %cst_63 : f32 to vector<16x1xf32>
    %139 = arith.divf %137, %138 : vector<16x1xf32>
    %140 = vector.broadcast %139 : vector<16x1xf32> to vector<16x32xf32>
    %141 = arith.subf %135, %140 : vector<16x32xf32>
    %142 = arith.mulf %141, %141 : vector<16x32xf32>
    %cst_64 = arith.constant dense<0.000000e+00> : vector<16xf32>
    %143 = vector.multi_reduction <add>, %142, %cst_64 [1] : vector<16x32xf32> to vector<16xf32>
    %144 = vector.shape_cast %143 : vector<16xf32> to vector<16x1xf32>
    %cst_65 = arith.constant 3.200000e+01 : f32
    %145 = vector.broadcast %cst_65 : f32 to vector<16x1xf32>
    %146 = arith.divf %144, %145 : vector<16x1xf32>
    %147 = vector.broadcast %139 : vector<16x1xf32> to vector<16x32xf32>
    %148 = arith.subf %135, %147 : vector<16x32xf32>
    %cst_66 = arith.constant 9.99999974E-6 : f32
    %149 = vector.broadcast %cst_66 : f32 to vector<16x1xf32>
    %150 = arith.addf %146, %149 : vector<16x1xf32>
    %151 = math.rsqrt %150 : vector<16x1xf32>
    %152 = vector.broadcast %151 : vector<16x1xf32> to vector<16x32xf32>
    %153 = arith.mulf %148, %152 : vector<16x32xf32>
    %154 = arith.truncf %153 : vector<16x32xf32> to vector<16x32xbf16>
    %c0_67 = arith.constant 0 : index
    %c0_68 = arith.constant 0 : index
    %155 = vector.load %arg12[%c0_67, %c0_68] : memref<32x64xbf16, #tpu.memory_space<vmem>>, vector<32x64xbf16>
    %cst_69 = arith.constant dense<0.000000e+00> : vector<16x64xf32>
    %156 = tpu.matmul %154, %155, %cst_69 {dimension_numbers = #tpu.dot_dimension_numbers<[1], [0], [0], [1], [0, 0, 1, 1], [], []>} : vector<16x32xbf16>, vector<32x64xbf16>, vector<16x64xf32> -> vector<16x64xf32>
    %cst_70 = arith.constant 0.000000e+00 : f32
    %157 = vector.broadcast %cst_70 : f32 to vector<16x64xf32>
    %158 = arith.maximumf %156, %157 : vector<16x64xf32>
    %159 = arith.truncf %158 : vector<16x64xf32> to vector<16x64xbf16>
    %c0_71 = arith.constant 0 : index
    %c0_72 = arith.constant 0 : index
    %160 = vector.load %arg13[%c0_71, %c0_72] : memref<64x32xbf16, #tpu.memory_space<vmem>>, vector<64x32xbf16>
    %cst_73 = arith.constant dense<0.000000e+00> : vector<16x32xf32>
    %161 = tpu.matmul %159, %160, %cst_73 {dimension_numbers = #tpu.dot_dimension_numbers<[1], [0], [0], [1], [0, 0, 1, 1], [], []>} : vector<16x64xbf16>, vector<64x32xbf16>, vector<16x32xf32> -> vector<16x32xf32>
    %162 = arith.addf %161, %153 : vector<16x32xf32>
    %cst_74 = arith.constant dense<0.000000e+00> : vector<16xf32>
    %163 = vector.multi_reduction <add>, %162, %cst_74 [1] : vector<16x32xf32> to vector<16xf32>
    %164 = vector.shape_cast %163 : vector<16xf32> to vector<16x1xf32>
    %cst_75 = arith.constant 3.200000e+01 : f32
    %165 = vector.broadcast %cst_75 : f32 to vector<16x1xf32>
    %166 = arith.divf %164, %165 : vector<16x1xf32>
    %167 = vector.broadcast %166 : vector<16x1xf32> to vector<16x32xf32>
    %168 = arith.subf %162, %167 : vector<16x32xf32>
    %169 = arith.mulf %168, %168 : vector<16x32xf32>
    %cst_76 = arith.constant dense<0.000000e+00> : vector<16xf32>
    %170 = vector.multi_reduction <add>, %169, %cst_76 [1] : vector<16x32xf32> to vector<16xf32>
    %171 = vector.shape_cast %170 : vector<16xf32> to vector<16x1xf32>
    %cst_77 = arith.constant 3.200000e+01 : f32
    %172 = vector.broadcast %cst_77 : f32 to vector<16x1xf32>
    %173 = arith.divf %171, %172 : vector<16x1xf32>
    %174 = vector.broadcast %166 : vector<16x1xf32> to vector<16x32xf32>
    %175 = arith.subf %162, %174 : vector<16x32xf32>
    %cst_78 = arith.constant 9.99999974E-6 : f32
    %176 = vector.broadcast %cst_78 : f32 to vector<16x1xf32>
    %177 = arith.addf %173, %176 : vector<16x1xf32>
    %178 = math.rsqrt %177 : vector<16x1xf32>
    %179 = vector.broadcast %178 : vector<16x1xf32> to vector<16x32xf32>
    %180 = arith.mulf %175, %179 : vector<16x32xf32>
    %181 = vector.shape_cast %180 : vector<16x32xf32> to vector<2x8x32xf32>
    %c0_79 = arith.constant 0 : index
    %c0_80 = arith.constant 0 : index
    %c0_81 = arith.constant 0 : index
    %182 = vector.load %arg14[%c0_79, %c0_80, %c0_81] : memref<2x8x32xf32, #tpu.memory_space<vmem>>, vector<2x8x32xf32>
    tpu.vector_store %arg14[%c0_79, %c0_80, %c0_81], %181 {strides = array<i32>} : memref<2x8x32xf32, #tpu.memory_space<vmem>>, vector<2x8x32xf32>,
    return
  }
  func.func @transform_0(%arg0: i32) -> (i32, i32, i32) {
    %c0_i32 = arith.constant 0 : i32
    %c0_i32_0 = arith.constant 0 : i32
    %c0_i32_1 = arith.constant 0 : i32
    return %arg0, %c0_i32, %c0_i32_0 : i32, i32, i32
  }
  func.func @transform_1(%arg0: i32) -> (i32, i32, i32) {
    %c0_i32 = arith.constant 0 : i32
    %c0_i32_0 = arith.constant 0 : i32
    %c0_i32_1 = arith.constant 0 : i32
    return %arg0, %c0_i32, %c0_i32_0 : i32, i32, i32
  }
  func.func @transform_2(%arg0: i32) -> (i32, i32, i32) {
    %c0_i32 = arith.constant 0 : i32
    %c0_i32_0 = arith.constant 0 : i32
    %c0_i32_1 = arith.constant 0 : i32
    return %arg0, %c0_i32, %c0_i32_0 : i32, i32, i32
  }
  func.func @transform_3(%arg0: i32) -> (i32, i32) {
    %c0_i32 = arith.constant 0 : i32
    %c0_i32_0 = arith.constant 0 : i32
    %c0_i32_1 = arith.constant 0 : i32
    return %c0_i32, %c0_i32_0 : i32, i32
  }
  func.func @transform_4(%arg0: i32) -> (i32, i32) {
    %c0_i32 = arith.constant 0 : i32
    %c0_i32_0 = arith.constant 0 : i32
    %c0_i32_1 = arith.constant 0 : i32
    return %c0_i32, %c0_i32_0 : i32, i32
  }
  func.func @transform_5(%arg0: i32) -> (i32, i32) {
    %c0_i32 = arith.constant 0 : i32
    %c0_i32_0 = arith.constant 0 : i32
    %c0_i32_1 = arith.constant 0 : i32
    return %c0_i32, %c0_i32_0 : i32, i32
  }
  func.func @transform_6(%arg0: i32) -> (i32, i32) {
    %c0_i32 = arith.constant 0 : i32
    %c0_i32_0 = arith.constant 0 : i32
    %c0_i32_1 = arith.constant 0 : i32
    return %c0_i32, %c0_i32_0 : i32, i32
  }
  func.func @transform_7(%arg0: i32) -> (i32, i32) {
    %c0_i32 = arith.constant 0 : i32
    %c0_i32_0 = arith.constant 0 : i32
    %c0_i32_1 = arith.constant 0 : i32
    return %c0_i32, %c0_i32_0 : i32, i32
  }
  func.func @transform_8(%arg0: i32) -> (i32, i32) {
    %c0_i32 = arith.constant 0 : i32
    %c0_i32_0 = arith.constant 0 : i32
    %c0_i32_1 = arith.constant 0 : i32
    return %c0_i32, %c0_i32_0 : i32, i32
  }
  func.func @transform_9(%arg0: i32) -> (i32, i32) {
    %c0_i32 = arith.constant 0 : i32
    %c0_i32_0 = arith.constant 0 : i32
    %c0_i32_1 = arith.constant 0 : i32
    return %c0_i32, %c0_i32_0 : i32, i32
  }
  func.func @transform_10(%arg0: i32) -> (i32, i32) {
    %c0_i32 = arith.constant 0 : i32
    %c0_i32_0 = arith.constant 0 : i32
    %c0_i32_1 = arith.constant 0 : i32
    return %c0_i32, %c0_i32_0 : i32, i32
  }
  func.func @transform_11(%arg0: i32) -> (i32, i32) {
    %c0_i32 = arith.constant 0 : i32
    %c0_i32_0 = arith.constant 0 : i32
    %c0_i32_1 = arith.constant 0 : i32
    return %c0_i32, %c0_i32_0 : i32, i32
  }
  func.func @transform_12(%arg0: i32) -> (i32, i32) {
    %c0_i32 = arith.constant 0 : i32
    %c0_i32_0 = arith.constant 0 : i32
    %c0_i32_1 = arith.constant 0 : i32
    return %c0_i32, %c0_i32_0 : i32, i32
  }
  func.func @transform_13(%arg0: i32) -> (i32, i32, i32) {
    %c0_i32 = arith.constant 0 : i32
    %c0_i32_0 = arith.constant 0 : i32
    %c0_i32_1 = arith.constant 0 : i32
    return %arg0, %c0_i32, %c0_i32_0 : i32, i32, i32
  }
  func.func @transform_14(%arg0: i32) -> (i32, i32, i32, i32) {
    %c0_i32 = arith.constant 0 : i32
    %c0_i32_0 = arith.constant 0 : i32
    %c0_i32_1 = arith.constant 0 : i32
    %c0_i32_2 = arith.constant 0 : i32
    return %arg0, %c0_i32, %c0_i32_0, %c0_i32_1 : i32, i32, i32, i32
  }
  func.func @transform_15(%arg0: i32) -> (i32, i32, i32, i32) {
    %c0_i32 = arith.constant 0 : i32
    %c0_i32_0 = arith.constant 0 : i32
    %c0_i32_1 = arith.constant 0 : i32
    %c0_i32_2 = arith.constant 0 : i32
    return %arg0, %c0_i32, %c0_i32_0, %c0_i32_1 : i32, i32, i32, i32
  }
}

</mosaic_0001>

<bundles_post_ra>
// kernel: decoder_layer.1
= control target key start
LH: loop header
LB: loop body
LE: loop exit
PB: predicated region body
PF: predicated region fallthrough
CT: control target
= control target key end

     0   :  { %21 = vsyncpa [#allocation3], 0  ;;  %v2646_v1 = vmov 0.0   ;;  %vm2647_vm0 = vmmov 0   ;;  %vm127_vm1 = vcmask 261120   ;;  %s3193_s0 = inlined_call_operand.vmem [shape: f32[2,8,32], index: 0, kind: input, shape index: {}]   ;;  %s3194_s1 = inlined_call_operand.vmem [shape: f32[2,10,48], index: 1, kind: input, shape index: {}]   ;;  %s3195_s2 = inlined_call_operand.vmem [shape: f32[2,8,8], index: 2, kind: input, shape index: {}]   ;;  %s3196_s3 = inlined_call_operand.vmem [shape: bf16[32,32], index: 3, kind: input, shape index: {}]   ;;  %s3197_s4 = inlined_call_operand.vmem [shape: bf16[32,32], index: 4, kind: input, shape index: {}]   ;;  %s3198_s5 = inlined_call_operand.vmem [shape: bf16[32,32], index: 5, kind: input, shape index: {}]   ;;  %s3199_s6 = inlined_call_operand.vmem [shape: bf16[32,32], index: 6, kind: input, shape index: {}]   ;;  %s3200_s7 = inlined_call_operand.vmem [shape: bf16[32,32], index: 7, kind: input, shape index: {}]   ;;  %s3201_s8 = inlined_call_operand.vmem [shape: bf16[48,32], index: 8, kind: input, shape index: {}]   ;;  %s3202_s9 = inlined_call_operand.vmem [shape: bf16[48,32], index: 9, kind: input, shape index: {}]   ;;  %s3203_s10 = inlined_call_operand.vmem [shape: bf16[32,32], index: 10, kind: input, shape index: {}]   ;;  %s3204_s11 = inlined_call_operand.vmem [shape: bf16[32,64], index: 11, kind: input, shape index: {}]   ;;  %s3205_s12 = inlined_call_operand.vmem [shape: bf16[64,32], index: 12, kind: input, shape index: {}]   ;;  %s3206_s13 = inlined_call_operand.hbm [shape: f32[2,8,32], index: 13, kind: output, shape index: {0}]   ;;  %s3207_s14 = inlined_call_operand.hbm [shape: f32[2,2,8,8], index: 14, kind: output, shape index: {1}]   ;;  %s3208_s15 = inlined_call_operand.hbm [shape: f32[2,2,8,10], index: 15, kind: output, shape index: {2}]  }
   0x1   :  { %v2506_v0 = vld [vmem:[%s3197_s4] sm:$0xff]   ;;  %2309 = vmatprep.subr.bf16.mxu1 %v2646_v1  ;;  %2301 = vmatprep.subr.bf16.mxu0 %v2646_v1  ;;  %v2508_v3 = vld [vmem:[%s3197_s4 + $0x8] sm:$0xff]  }
   0x2   :  { %v2507_v2 = vld [vmem:[%s3196_s3] sm:$0xff]   ;;  %2310 = vmatpush3.bf16.msra.mxu1 %v2506_v0  ;;  %2313 = vmatprep.mubr.msk.bf16.mxu1 %vm2647_vm0, %v2646_v1  ;;  %v2759_v5 = vld [vmem:[%s3193_s0 + $0x8] sm:$0xff] }
   0x3   :  { %2311 = vmatprep.subr.bf16.mxu1 %v2646_v1  ;;  %2302 = vmatpush3.bf16.msra.mxu0 %v2507_v2  ;;  %v2754_v4 = vld [vmem:[%s3193_s0] sm:$0xff]  ;;  %v2509_v6 = vld [vmem:[%s3196_s3 + $0x8] sm:$0xff]  }
   0x4   :  { %2303 = vmatprep.subr.bf16.mxu0 %v2646_v1  ;;  %2305 = vmatprep.mubr.msk.bf16.mxu0 %vm2647_vm0, %v2646_v1  ;;  %v110_v7 = vpack.c.bf16 %v2759_v5, %v2754_v4  ;;  %v2510_v8 = vld [vmem:[%s3198_s5] sm:$0xff]   ;;  %v2511_v9 = vld [vmem:[%s3198_s5 + $0x8] sm:$0xff]  }
   0x6   :  { %2312 = vmatpush3.bf16.msra.mxu1 %v2508_v3 }
   0x7   :  { %2304 = vmatpush3.bf16.msra.mxu0 %v2509_v6  ;;  %2325 = vmatprep.subr.bf16.mxu1 %v2646_v1 }
   0x8   :  { %2317 = vmatprep.subr.bf16.mxu0 %v2646_v1 }
   0x9   :  { %2314 = vmatmul.mubr.msk.bf16.vlgmr.msra.gmra.mrb[0].mxu1 %vm127_vm1, %v110_v7 }
   0xa   :  { %2306 = vmatmul.mubr.msk.bf16.vlgmr.msra.gmra.mrb[0].mxu0 %vm127_vm1, %v110_v7  ;;  %2327 = vmatprep.mubr.msk.bf16.mxu1 %vm2647_vm0, %v2646_v1 }
   0xb   :  { %2318 = vmatpush3.bf16.msra.mxu0 %v2510_v8  ;;  %2321 = vmatprep.mubr.msk.bf16.mxu0 %vm2647_vm0, %v2646_v1 }
   0xc   :  { %2319 = vmatprep.subr.bf16.mxu0 %v2646_v1 }
   0xf   :  { %2320 = vmatpush3.bf16.msra.mxu0 %v2511_v9 }
  0x10   :  { %2331 = vmatprep.subr.bf16.mxu0 %v2646_v1 }
  0x12   :  { %2322 = vmatmul.mubr.msk.bf16.vlgmr.msra.gmra.mrb[4].mxu0 %vm127_vm1, %v110_v7 }
  0x13   :  { %22 = vsyncpa [#allocation5], 0  ;;  %2333 = vmatprep.mubr.msk.bf16.mxu0 %vm2647_vm0, %v2646_v1  ;;  %vm306_vm2 = vcmask 130048   ;;  %s2648_s5 = smov 112   ;;  %vm427_vm3 = vcmask 1043456   ;;  %v2812_v34 = vld [vmem:[%s3195_s2] sm:$0xff] }
  0x14   :  { %v2817_v36 = vld [vmem:[%s3195_s2 + $0x8] sm:$0xff]  ;;  %vm399_vm4 = vcmask 64512   ;;  %s2649_s23 = smov 16   ;;  %vm973_vm5 = vcmask 392192   ;;  %vm1493_vm6 = vcmask 1044480   ;;  %vm1426_vm7 = vcmask 80896  }
  0x15   :  { %vm2039_vm8 = vcmask 523264  }
  0xdc   :  { %v224_v10 = vpop.f32.mrb[0].mxu1 }
  0xdd   :  { %v2227_v11 = vpack.c.bf16 %v224_v10, %v224_v10  ;;  %v2315_v12 = vpop.f32.mrb[1].mxu1  ;;  %v165_v13 = vpop.f32.mrb[0].mxu0 }
  0xde   :  { %v227_v14 = vpop.f32.mrb[2].mxu1  ;;  %v2307_v15 = vpop.f32.mrb[1].mxu0  ;;  %v172_v19 = vmul.f32 0.25, %v165_v13 }
  0xdf   :  { %v311_v16 = vsel %vm306_vm2, %v2227_v11, 0  ;;  %v2228_v17 = vpack.c.bf16 %v227_v14, %v227_v14  ;;  %v2316_v18 = vpop.f32.mrb[3].mxu1  ;;  %v168_v20 = vpop.f32.mrb[2].mxu0 }
  0xe0   :  { %2326 = vmatpush3.bf16.xpose.msra.mxu1 %v311_v16  ;;  %v2308_v21 = vpop.f32.mrb[3].mxu0  ;;  %v2225_v23 = vpack.c.bf16 %v172_v19, %v172_v19  ;;  %v173_v24 = vmul.f32 0.25, %v168_v20 }
  0xe1   :  { %v357_v22 = vsel %vm306_vm2, %v2228_v17, 0  ;;  %569 = vrot.lane.b32.xlu1 %v2228_v17, %s2648_s5  ;;  %2337 = vmatprep.subr.bf16.mxu1 %v2646_v1 }
  0xe2   :  { %2332 = vmatpush3.bf16.xpose.msra.mxu0 %v357_v22  ;;  %v2226_v28 = vpack.c.bf16 %v173_v24, %v173_v24 }
  0xe3   :  { %2343 = vmatprep.subr.bf16.mxu0 %v2646_v1 }
  0xe5   :  { %v281_v25 = vpop.f32.mrb[4].mxu0 }
  0xe6   :  { %v2793_v26 = vpack.c.bf16 %v281_v25, %v281_v25  ;;  %v2323_v27 = vpop.f32.mrb[5].mxu0 }
  0xe7   :  { %2328 = vmatmul.mubr.msk.bf16.vlgmr.msra.gmra.mrb[4].mxu1 %vm306_vm2, %v2225_v23  ;;  %v284_v29 = vpop.f32.mrb[6].mxu0 }
  0xe8   :  { %v429_v30 = vsel %vm427_vm3, %v2793_v26, 0  ;;  %v2798_v31 = vpack.c.bf16 %v284_v29, %v284_v29  ;;  %v2324_v32 = vpop.f32.mrb[7].mxu0  ;;  %2339 = vmatprep.mubr.msk.bf16.mxu1 %vm2647_vm0, %v2646_v1 }
  0xe9   :  { %2334 = vmatmul.mubr.msk.bf16.vlgmr.msra.gmra.mrb[8].mxu0 %vm306_vm2, %v2226_v28  ;;  %2338 = vmatpush3.bf16.msra.mxu1 %v429_v30 }
  0xea   :  { %v475_v33 = vsel %vm427_vm3, %v2798_v31, 0  ;;  %2349 = vmatprep.subr.bf16.mxu1 %v2646_v1  ;;  %2345 = vmatprep.mubr.msk.bf16.mxu0 %vm2647_vm0, %v2646_v1 }
  0xeb   :  { %2344 = vmatpush3.bf16.msra.mxu0 %v475_v33 }
  0xec   :  { %2355 = vmatprep.subr.bf16.mxu0 %v2646_v1 }
 0x153   :  { %v570_v58 = vpop.permute.xlu1 %569 }
 0x154   :  { %v575_v8 = vsel %vm306_vm2, %v570_v58, 0 }
 0x1ba   :  { %v347_v35 = vpop.f32.mrb[4].mxu1 }
 0x1bb   :  { %v348_v37 = vadd.f32 %v347_v35, %v2812_v34  ;;  %v2329_v38 = vpop.f32.mrb[5].mxu1 }
 0x1bc   :  { %v350_v39 = vpop.f32.mrb[6].mxu1  ;;  %v393_v40 = vpop.f32.mrb[8].mxu0 }
 0x1bd   :  { %v394_v41 = vadd.f32 %v393_v40, %v2817_v36  ;;  %v2330_v42 = vpop.f32.mrb[7].mxu1  ;;  %v2335_v43 = vpop.f32.mrb[9].mxu0  ;;  %v400_v44 = vsel %vm399_vm4, %v348_v37, -inf }
 0x1be   :  { %401 = vmax.xlane.f32.xlu0 %v400_v44  ;;  %v396_v45 = vpop.f32.mrb[10].mxu0 }
 0x1bf   :  { %v2336_v46 = vpop.f32.mrb[11].mxu0  ;;  %v403_v47 = vsel %vm399_vm4, %v394_v41, -inf }
 0x1c2   :  { %404 = vmax.xlane.f32.xlu0 %v403_v47 }
 0x1d8   :  { %519 = vrot.lane.b32.xlu0 %v2227_v11, %s2648_s5 }
 0x24b   :  { %v402_v48 = vpop.xlane.xlu0 %401 }
 0x24c   :  { %v406_v49 = vsub.f32 %v348_v37, %v402_v48 }
 0x24e   :  { %v408_v50 = vmul.f32 1.442695, %v406_v49 }
 0x24f   :  { %v405_v51 = vpop.xlane.xlu0 %404 }
 0x250   :  { %2532 = vpow2.f32 %v408_v50  ;;  %v407_v52 = vsub.f32 %v394_v41, %v405_v51 }
 0x252   :  { %v410_v53 = vmul.f32 1.442695, %v407_v52 }
 0x253   :  { %v520_v63 = vpop.permute.xlu0 %519 }
 0x254   :  { %2534 = vpow2.f32 %v410_v53  ;;  %v525_v3 = vsel %vm306_vm2, %v520_v63, 0  ;;  %v2512_v53 = vld [vmem:[%s3199_s6] sm:$0xff]  }
 0x25a   :  { %v2533_v54 = vpop.eup %2532 }
 0x25b   :  { %v412_v55 = vsel %vm399_vm4, %v2533_v54, 0.0 }
 0x25c   :  { %413 = vadd.xlane.f32.xlu1 %v412_v55 }
 0x25e   :  { %v2535_v56 = vpop.eup %2534 }
 0x25f   :  { %v415_v57 = vsel %vm399_vm4, %v2535_v56, 0.0 }
 0x260   :  { %416 = vadd.xlane.f32.xlu1 %v415_v57 }
 0x271   :  { %517 = vrot.lane.b32.xlu1 %v2225_v23, %s2648_s5 }
 0x275   :  { %567 = vrot.lane.b32.xlu1 %v2226_v28, %s2648_s5 }
 0x2e9   :  { %v414_v59 = vpop.xlane.xlu1 %413 }
 0x2ea   :  { %2536 = vrcp.f32 %v414_v59 }
 0x2ed   :  { %v417_v60 = vpop.xlane.xlu1 %416 }
 0x2ee   :  { %2538 = vrcp.f32 %v417_v60 }
 0x2f1   :  { %v518_v9 = vpop.permute.xlu1 %517 }
 0x2f4   :  { %v2537_v61 = vpop.eup %2536 }
 0x2f5   :  { %v419_v62 = vmul.f32 %v2537_v61, %v2533_v54  ;;  %v568_v10 = vpop.permute.xlu1 %567  ;;  %v2513_v54 = vld [vmem:[%s3199_s6 + $0x8] sm:$0xff]  }
 0x2f7   :  { %737 = vst.msk [vmem:[#allocation4] sm:$0xff] %vm399_vm4, %v419_v62  ;;  %v422_v0 = vpack.c.bf16 %v419_v62, %v419_v62 }
 0x2f8   :  { %v2539_v2 = vpop.eup %2538 }
 0x2f9   :  { %v421_v6 = vmul.f32 %v2539_v2, %v2535_v56  ;;  %2340 = vmatmul.mubr.msk.bf16.vlgmr.msra.gmra.mrb[8].mxu1 %vm399_vm4, %v422_v0 }
 0x2fa   :  { %2350 = vmatpush3.bf16.xpose.msra.mxu1 %v525_v3  ;;  %2351 = vmatprep.mubr.msk.bf16.mxu1 %vm2647_vm0, %v2646_v1 }
 0x2fb   :  { %739 = vst.msk [vmem:[#allocation4 + $0x10] sm:$0xff] %vm399_vm4, %v421_v6  ;;  %v423_v7 = vpack.c.bf16 %v421_v6, %v421_v6  ;;  %2361 = vmatprep.subr.bf16.mxu1 %v2646_v1 }
 0x2fd   :  { %2346 = vmatmul.mubr.msk.bf16.vlgmr.msra.gmra.mrb[12].mxu0 %vm399_vm4, %v423_v7 }
 0x2fe   :  { %2356 = vmatpush3.bf16.xpose.msra.mxu0 %v575_v8  ;;  %2357 = vmatprep.mubr.msk.bf16.mxu0 %vm2647_vm0, %v2646_v1 }
 0x2ff   :  { %2367 = vmatprep.subr.bf16.mxu0 %v2646_v1 }
 0x301   :  { %2352 = vmatmul.mubr.msk.bf16.vlgmr.msra.gmra.mrb[12].mxu1 %vm306_vm2, %v518_v9 }
 0x302   :  { %2363 = vmatprep.mubr.msk.bf16.mxu1 %vm2647_vm0, %v2646_v1 }
 0x305   :  { %2358 = vmatmul.mubr.msk.bf16.vlgmr.msra.gmra.mrb[16].mxu0 %vm306_vm2, %v568_v10 }
 0x306   :  { %2369 = vmatprep.mubr.msk.bf16.mxu0 %vm2647_vm0, %v2646_v1 }
 0x3cc   :  { %v2846_v11 = vpop.f32.mrb[8].mxu1 }
 0x3cd   :  { %v2341_v12 = vpop.f32.mrb[9].mxu1 }
 0x3ce   :  { %v468_v13 = vpop.f32.mrb[10].mxu1 }
 0x3cf   :  { %v2342_v14 = vpop.f32.mrb[11].mxu1 }
 0x3d0   :  { %v2848_v15 = vpop.f32.mrb[12].mxu0 }
 0x3d1   :  { %v2347_v16 = vpop.f32.mrb[13].mxu0 }
 0x3d2   :  { %v514_v17 = vpop.f32.mrb[14].mxu0 }
 0x3d3   :  { %v2348_v18 = vpop.f32.mrb[15].mxu0 }
 0x3d4   :  { %v561_v19 = vpop.f32.mrb[12].mxu1 }
 0x3d5   :  { %v562_v20 = vadd.f32 %v561_v19, %v2812_v34  ;;  %v2353_v21 = vpop.f32.mrb[13].mxu1  ;;  %v54_v19 = vld [vmem:[%s3194_s1 + $0x10] sm:$0xff] }
 0x3d6   :  { %v564_v22 = vpop.f32.mrb[14].mxu1 }
 0x3d7   :  { %v2354_v23 = vpop.f32.mrb[15].mxu1  ;;  %v617_v24 = vsel %vm399_vm4, %v562_v20, -inf }
 0x3d8   :  { %618 = vmax.xlane.f32.xlu0 %v617_v24  ;;  %v611_v25 = vpop.f32.mrb[16].mxu0 }
 0x3d9   :  { %v612_v27 = vadd.f32 %v611_v25, %v2817_v36  ;;  %v2359_v28 = vpop.f32.mrb[17].mxu0  ;;  %v84_v25 = vcombine.high %v54_v19, %v54_v19 }
 0x3da   :  { %v614_v29 = vpop.f32.mrb[18].mxu0 }
 0x3db   :  { %v2360_v30 = vpop.f32.mrb[19].mxu0  ;;  %v620_v32 = vsel %vm399_vm4, %v612_v27, -inf  ;;  %v2159_v29 = vld.sshfl [vmem:[%s3194_s1 + $0x8] sm:$0x3 pattern:$0x76325410] }
 0x3dc   :  { %621 = vmax.xlane.f32.xlu1 %v620_v32 }
 0x3ed   :  { %689 = vrot.lane.b32.xlu1 %v2798_v31, %s2648_s5 }
 0x465   :  { %v619_v33 = vpop.xlane.xlu0 %618 }
 0x466   :  { %v623_v34 = vsub.f32 %v562_v20, %v619_v33  ;;  %v2650_v20 = vmov 1983009808  }
 0x467   :  { %v62_v21 = vunpack.c.l.s4 %v2650_v20 }
 0x468   :  { %v625_v35 = vmul.f32 1.442695, %v623_v34 }
 0x469   :  { %v622_v37 = vpop.xlane.xlu1 %621  ;;  %v63_v24 = vunpack.c.0.s8 %v62_v21 }
 0x46a   :  { %2540 = vpow2.f32 %v625_v35  ;;  %v624_v38 = vsub.f32 %v612_v27, %v622_v37  ;;  %v2516_v27 = vld [vmem:[%s3201_s8 + $0x10] sm:$0xff]  }
 0x46c   :  { %v627_v39 = vmul.f32 1.442695, %v624_v38 }
 0x46d   :  { %v690_v40 = vpop.permute.xlu1 %689 }
 0x46e   :  { %2542 = vpow2.f32 %v627_v39  ;;  %v695_v36 = vsel %vm427_vm3, %v690_v40, 0  ;;  %v2160_v40 = vld.sshfl [vmem:[%s3194_s1 + $0x18] sm:$0x3 pattern:$0x76325410] }
 0x46f   :  { %2368 = vmatpush3.bf16.msra.mxu0 %v695_v36 }
 0x470   :  { %2381 = vmatprep.subr.bf16.mxu0 %v2646_v1 }
 0x474   :  { %v2541_v41 = vpop.eup %2540 }
 0x475   :  { %v629_v42 = vsel %vm399_vm4, %v2541_v41, 0.0 }
 0x476   :  { %630 = vadd.xlane.f32.xlu0 %v629_v42 }
 0x478   :  { %v2543_v43 = vpop.eup %2542 }
 0x479   :  { %v632_v31 = vsel %vm399_vm4, %v2543_v43, 0.0 }
 0x47a   :  { %633 = vadd.xlane.f32.xlu0 %v632_v31 }
 0x490   :  { %641 = vrot.lane.b32.xlu0 %v2793_v26, %s2648_s5 }
 0x503   :  { %v631_v44 = vpop.xlane.xlu0 %630 }
 0x504   :  { %2544 = vrcp.f32 %v631_v44 }
 0x507   :  { %v634_v45 = vpop.xlane.xlu0 %633 }
 0x508   :  { %2546 = vrcp.f32 %v634_v45 }
 0x50b   :  { %v642_v46 = vpop.permute.xlu0 %641 }
 0x50c   :  { %v647_v47 = vsel %vm427_vm3, %v642_v46, 0 }
 0x50d   :  { %2362 = vmatpush3.bf16.msra.mxu1 %v647_v47 }
 0x50e   :  { %v2545_v48 = vpop.eup %2544  ;;  %2373 = vmatprep.subr.bf16.mxu1 %v2646_v1 }
 0x50f   :  { %v636_v49 = vmul.f32 %v2545_v48, %v2541_v41 }
 0x511   :  { %738 = vst.msk [vmem:[#allocation4 + $0x8] sm:$0xff] %vm399_vm4, %v636_v49  ;;  %v639_v50 = vpack.c.bf16 %v636_v49, %v636_v49 }
 0x512   :  { %v2547_v51 = vpop.eup %2546 }
 0x513   :  { %v638_v52 = vmul.f32 %v2547_v51, %v2543_v43  ;;  %2364 = vmatmul.mubr.msk.bf16.vlgmr.msra.gmra.mrb[16].mxu1 %vm399_vm4, %v639_v50 }
 0x514   :  { %2377 = vmatprep.mubr.msk.bf16.mxu1 %vm2647_vm0, %v2646_v1  ;;  %2374 = vmatpush3.bf16.msra.mxu1 %v2512_v53 }
 0x515   :  { %740 = vst.msk [vmem:[#allocation4 + $0x18] sm:$0xff] %vm399_vm4, %v638_v52  ;;  %v640_v26 = vpack.c.bf16 %v638_v52, %v638_v52  ;;  %2375 = vmatprep.subr.bf16.mxu1 %v2646_v1 }
 0x517   :  { %2370 = vmatmul.mubr.msk.bf16.vlgmr.msra.gmra.mrb[20].mxu0 %vm399_vm4, %v640_v26 }
 0x518   :  { %2385 = vmatprep.mubr.msk.bf16.mxu0 %vm2647_vm0, %v2646_v1  ;;  %2376 = vmatpush3.bf16.msra.mxu1 %v2513_v54 }
 0x5e6   :  { %v683_v55 = vpop.f32.mrb[16].mxu1 }
 0x5e7   :  { %v2365_v56 = vpop.f32.mrb[17].mxu1 }
 0x5e8   :  { %v686_v57 = vpop.f32.mrb[18].mxu1 }
 0x5e9   :  { %v2366_v58 = vpop.f32.mrb[19].mxu1 }
 0x5ea   :  { %v731_v59 = vpop.f32.mrb[20].mxu0 }
 0x5eb   :  { %v2496_v60 = vpack.i.bf16 %v731_v59, %v683_v55  ;;  %v2371_v61 = vpop.f32.mrb[21].mxu0 }
 0x5ec   :  { %v734_v62 = vpop.f32.mrb[22].mxu0 }
 0x5ed   :  { %2497 = vrot.lane.b32.xlu1 %v2496_v60, %s2649_s23  ;;  %v2372_v63 = vpop.f32.mrb[23].mxu0  ;;  %v2519_v62 = vld [vmem:[%s3200_s7] sm:$0xff]  }
 0x5ee   :  { %2382 = vmatpush3.bf16.msra.mxu0 %v2519_v62  ;;  %v2520_v63 = vld [vmem:[%s3200_s7 + $0x8] sm:$0xff]  }
 0x5ef   :  { %2383 = vmatprep.subr.bf16.mxu0 %v2646_v1 }
 0x5f2   :  { %2384 = vmatpush3.bf16.msra.mxu0 %v2520_v63 }
 0x65f   :  { %v2498_v0 = vpop.permute.xlu1 %2497 }
 0x660   :  { %v2500_v2 = vunpack.i.h.bf16 %v2498_v0  ;;  %v2499_v3 = vunpack.i.l.bf16 %v2498_v0  ;;  %v2944_v0 = vld [vmem:[%s3202_s9] sm:$0xff]  }
 0x661   :  { %2399 = vmatprep.subr.bf16.mxu0 %v2944_v0 }
 0x662   :  { %v750_v6 = vsel %vm306_vm2, %v2848_v15, %v2500_v2  ;;  %v749_v7 = vsel %vm306_vm2, %v2846_v11, %v2499_v3  ;;  %v2514_v11 = vld [vmem:[%s3201_s8] sm:$0xff]   ;;  %v2515_v15 = vld [vmem:[%s3201_s8 + $0x8] sm:$0xff]   ;;  %v2651_v2 = vmov 1966171168  }
 0x663   :  { %v751_v8 = vpack.c.bf16 %v750_v6, %v749_v7  ;;  %2389 = vmatprep.subr.bf16.mxu1 %v2514_v11  ;;  %v1112_v3 = vunpack.c.l.s4 %v2651_v2 }
 0x665   :  { %2378 = vmatmul.mubr.msk.bf16.vlgmr.msra.gmra.mrb[20].mxu1 %vm127_vm1, %v751_v8  ;;  %v1113_v6 = vunpack.c.0.s8 %v1112_v3 }
 0x666   :  { %2390 = vmatpush3.bf16.msra.mxu1 %v2514_v11 }
 0x667   :  { %2391 = vmatprep.subr.bf16.mxu1 %v2515_v15 }
 0x66a   :  { %2392 = vmatpush3.bf16.msra.mxu1 %v2515_v15 }
 0x66b   :  { %2393 = vmatprep.subr.bf16.mxu1 %v2516_v27 }
 0x66e   :  { %2394 = vmatpush3.bf16.msra.mxu1 %v2516_v27 }
 0x66f   :  { %2409 = vmatprep.subr.bf16.mxu1 %v2646_v1 }
 0x738   :  { %v805_v9 = vpop.f32.mrb[20].mxu1 }
 0x739   :  { %v806_v10 = vadd.f32 %v805_v9, %v2754_v4  ;;  %v2379_v12 = vpop.f32.mrb[21].mxu1  ;;  %v64_v4 = vlaneseq }
 0x73a   :  { %v808_v13 = vpop.f32.mrb[22].mxu1 }
 0x73b   :  { %v809_v14 = vadd.f32 %v808_v13, %v2759_v5  ;;  %v2380_v16 = vpop.f32.mrb[23].mxu1  ;;  %v812_v17 = vsel %vm127_vm1, %v806_v10, 0.0  ;;  %v52_v5 = vld [vmem:[%s3194_s1] sm:$0xff]  ;;  %v2901_v22 = vshrl.u32 %v64_v4, 7 }
 0x73c   :  { %813 = vadd.xlane.f32.xlu1 %v812_v17  ;;  %v60_v23 = vcombine.high %v52_v5, %v52_v5 }
 0x73d   :  { %v815_v18 = vsel %vm127_vm1, %v809_v14, 0.0  ;;  %v66_v28 = vsub.s32 %v63_v24, %v2901_v22  ;;  %v2948_v8 = vsub.s32 %v1113_v6, %v2901_v22 }
 0x73e   :  { %816 = vadd.xlane.f32.xlu0 %v815_v18 }
 0x73f   :  { %v67_v30 = vrot.slane %v52_v5, %v66_v28  ;;  %v74_v32 = vrot.slane %v60_v23, %v66_v28  ;;  %v91_v33 = vrot.slane %v54_v19, %v66_v28  ;;  %v98_v34 = vrot.slane %v84_v25, %v66_v28 }
 0x741   :  { %v75_v35 = vcombine.high %v67_v30, %v67_v30  ;;  %v76_v37 = vcombine.high %v74_v32, %v74_v32  ;;  %v99_v38 = vcombine.high %v91_v33, %v91_v33  ;;  %v857_v39 = vcombine.low %v2159_v29, %v91_v33 }
 0x742   :  { %v100_v36 = vcombine.high %v98_v34, %v98_v34 }
 0x743   :  { %v840_v41 = vcombine.low %v67_v30, %v75_v35  ;;  %v841_v42 = vcombine.low %v74_v32, %v76_v37  ;;  %v858_v43 = vcombine.low %v99_v38, %v98_v34  ;;  %v865_v31 = vrot.slane %v857_v39, %v66_v28 }
 0x744   :  { %v874_v44 = vcombine.low %v100_v36, %v2160_v40 }
 0x745   :  { %v848_v45 = vrot.slane %v840_v41, %v66_v28  ;;  %v855_v46 = vrot.slane %v841_v42, %v66_v28  ;;  %v872_v47 = vrot.slane %v858_v43, %v66_v28 }
 0x746   :  { %v881_v48 = vrot.slane %v874_v44, %v66_v28 }
 0x747   :  { %v856_v49 = vcombine.low %v848_v45, %v855_v46  ;;  %v873_v50 = vcombine.low %v865_v31, %v872_v47 }
 0x748   :  { %v2914_v51 = vpack.c.bf16 %v881_v48, %v881_v48 }
 0x749   :  { %v2916_v52 = vpack.c.bf16 %v873_v50, %v856_v49 }
 0x74b   :  { %2395 = vmatprep.mubr.msk.bf16.mxu1 %vm973_vm5, %v2916_v52 }
 0x74c   :  { %2396 = vmatmul.mubr.msk.bf16.vlgmr.msra.gmra.mrb[24].mxu1 %vm973_vm5, %v2914_v51 }
 0x74d   :  { %2411 = vmatprep.mubr.msk.bf16.mxu1 %vm2647_vm0, %v2646_v1 }
 0x7c9   :  { %v814_v26 = vpop.xlane.xlu1 %813 }
 0x7ca   :  { %v819_v53 = vmul.f32 0.03125, %v814_v26 }
 0x7cb   :  { %v817_v54 = vpop.xlane.xlu0 %816 }
 0x7cc   :  { %v2924_v55 = vsub.f32 %v806_v10, %v819_v53  ;;  %v820_v56 = vmul.f32 0.03125, %v817_v54 }
 0x7ce   :  { %v2926_v57 = vsub.f32 %v809_v14, %v820_v56  ;;  %v823_v58 = vmul.f32 %v2924_v55, %v2924_v55 }
 0x7d0   :  { %v825_v59 = vsel %vm127_vm1, %v823_v58, 0.0  ;;  %v824_v60 = vmul.f32 %v2926_v57, %v2926_v57 }
 0x7d1   :  { %826 = vadd.xlane.f32.xlu0 %v825_v59 }
 0x7d2   :  { %v828_v61 = vsel %vm127_vm1, %v824_v60, 0.0 }
 0x7d5   :  { %829 = vadd.xlane.f32.xlu0 %v828_v61  ;;  %v2522_v61 = vld [vmem:[%s3202_s9 + $0x8] sm:$0xff]  }
 0x81f   :  { %v2397_v7 = vpop.f32.mrb[24].mxu1 }
 0x820   :  { %v1107_v9 = vpack.c.bf16 %v2397_v7, %v2397_v7  ;;  %v1014_v10 = vpop.f32.mrb[25].mxu1 }
 0x821   :  { %v2398_v12 = vpop.f32.mrb[26].mxu1 }
 0x822   :  { %v1165_v13 = vrot.slane %v1107_v9, %v2948_v8  ;;  %v1017_v14 = vpop.f32.mrb[27].mxu1 }
 0x823   :  { %v1106_v16 = vpack.c.bf16 %v1017_v14, %v1014_v10  ;;  %v2202_v17 = vpack.c.bf16 %v1017_v14, %v1017_v14 }
 0x824   :  { %v1166_v18 = vcombine.high %v1165_v13, %v1165_v13  ;;  %v1173_v22 = vrot.slane %v1165_v13, %v2948_v8 }
 0x825   :  { %v1117_v11 = vrot.slane %v1106_v16, %v2948_v8  ;;  %v1124_v15 = vrot.slane %v2202_v17, %v2948_v8 }
 0x826   :  { %v1180_v21 = vrot.slane %v1166_v18, %v2948_v8 }
 0x827   :  { %v1125_v4 = vcombine.high %v1117_v11, %v1117_v11  ;;  %v1126_v5 = vcombine.high %v1124_v15, %v1124_v15  ;;  %v1133_v19 = vrot.slane %v1117_v11, %v2948_v8  ;;  %v1140_v20 = vrot.slane %v1124_v15, %v2948_v8 }
 0x828   :  { %v1363_v33 = vrot.slane %v1180_v21, %v2948_v8 }
 0x829   :  { %v1147_v23 = vrot.slane %v1125_v4, %v2948_v8  ;;  %v1154_v24 = vrot.slane %v1126_v5, %v2948_v8  ;;  %v1156_v25 = vcombine.high %v1140_v20, %v1140_v20  ;;  %v1278_v27 = vrot.slane %v1140_v20, %v2948_v8 }
 0x82a   :  { %v1378_v43 = vrot.slane %v1363_v33, %v2948_v8 }
 0x82b   :  { %v1158_v28 = vcombine.high %v1154_v24, %v1154_v24  ;;  %v1256_v29 = vcombine.low %v1133_v19, %v1147_v23  ;;  %v2204_v30 = vcombine.high %v1133_v19, %v1147_v23  ;;  %v1341_v32 = vcombine.low %v1154_v24, %v1156_v25 }
 0x82c   :  { %v1293_v40 = vrot.slane %v1278_v27, %v2948_v8 }
 0x82d   :  { %v1264_v34 = vrot.slane %v1256_v29, %v2948_v8  ;;  %v1271_v35 = vrot.slane %v2204_v30, %v2948_v8  ;;  %v1342_v37 = vcombine.low %v1158_v28, %v1173_v22  ;;  %v1349_v38 = vrot.slane %v1341_v32, %v2948_v8 }
 0x82f   :  { %v1279_v39 = vcombine.low %v1264_v34, %v1271_v35  ;;  %v1356_v36 = vrot.slane %v1342_v37, %v2948_v8 }
 0x831   :  { %v1286_v41 = vrot.slane %v1279_v39, %v2948_v8  ;;  %v1364_v42 = vcombine.low %v1349_v38, %v1356_v36 }
 0x833   :  { %v2968_v31 = vcombine.low %v1286_v41, %v1293_v40  ;;  %v1371_v44 = vrot.slane %v1364_v42, %v2948_v8 }
 0x835   :  { %v1299_v45 = vsel %vm306_vm2, %v2968_v31, 0  ;;  %v2973_v46 = vcombine.low %v1371_v44, %v1378_v43 }
 0x836   :  { %2410 = vmatpush3.bf16.xpose.msra.mxu1 %v1299_v45 }
 0x837   :  { %2421 = vmatprep.subr.bf16.mxu1 %v2646_v1 }
 0x85e   :  { %v827_v47 = vpop.xlane.xlu0 %826 }
 0x85f   :  { %v831_v48 = vmul.f32 0.03125, %v827_v47 }
 0x861   :  { %v833_v49 = vadd.f32 1e-05, %v831_v48 }
 0x862   :  { %v830_v50 = vpop.xlane.xlu0 %829 }
 0x863   :  { %v832_v26 = vmul.f32 0.03125, %v830_v50  ;;  %2548 = vrsqrt.f32 %v833_v49 }
 0x865   :  { %v834_v53 = vadd.f32 1e-05, %v832_v26 }
 0x867   :  { %2550 = vrsqrt.f32 %v834_v53 }
 0x86d   :  { %v2549_v54 = vpop.eup %2548 }
 0x86e   :  { %v2977_v58 = vmul.f32 %v2549_v54, %v2924_v55  ;;  %v2523_v55 = vld [vmem:[%s3202_s9 + $0x10] sm:$0xff]  }
 0x871   :  { %v2551_v56 = vpop.eup %2550 }
 0x872   :  { %v2980_v59 = vmul.f32 %v2551_v56, %v2926_v57  ;;  %v1384_v57 = vsel %vm306_vm2, %v2973_v46, 0 }
 0x874   :  { %v839_v60 = vpack.c.bf16 %v2980_v59, %v2977_v58 }
 0x876   :  { %2386 = vmatmul.mubr.msk.bf16.vlgmr.msra.gmra.mrb[24].mxu0 %vm127_vm1, %v839_v60 }
 0x877   :  { %2400 = vmatpush3.bf16.msra.mxu0 %v2944_v0  ;;  %2405 = vmatprep.mubr.msk.bf16.mxu0 %vm973_vm5, %v2916_v52 }
 0x878   :  { %2401 = vmatprep.subr.bf16.mxu0 %v2522_v61 }
 0x87b   :  { %2402 = vmatpush3.bf16.msra.mxu0 %v2522_v61 }
 0x87c   :  { %2403 = vmatprep.subr.bf16.mxu0 %v2523_v55 }
 0x87f   :  { %2404 = vmatpush3.bf16.msra.mxu0 %v2523_v55 }
 0x880   :  { %2415 = vmatprep.subr.bf16.mxu0 %v2646_v1 }
 0x882   :  { %2406 = vmatmul.mubr.msk.bf16.vlgmr.msra.gmra.mrb[28].mxu0 %vm973_vm5, %v2914_v51 }
 0x883   :  { %2417 = vmatprep.mubr.msk.bf16.mxu0 %vm2647_vm0, %v2646_v1 }
 0x888   :  { %2416 = vmatpush3.bf16.xpose.msra.mxu0 %v1384_v57 }
 0x889   :  { %2427 = vmatprep.subr.bf16.mxu0 %v2646_v1 }
 0x949   :  { %v940_v52 = vpop.f32.mrb[24].mxu0 }
 0x94a   :  { %v947_v62 = vmul.f32 0.25, %v940_v52  ;;  %v2387_v63 = vpop.f32.mrb[25].mxu0 }
 0x94b   :  { %v943_v0 = vpop.f32.mrb[26].mxu0 }
 0x94c   :  { %v3002_v2 = vpack.c.bf16 %v947_v62, %v947_v62  ;;  %v948_v3 = vmul.f32 0.25, %v943_v0  ;;  %v2388_v6 = vpop.f32.mrb[27].mxu0 }
 0x94e   :  { %v3004_v7 = vpack.c.bf16 %v948_v3, %v948_v3  ;;  %2412 = vmatmul.mubr.msk.bf16.vlgmr.msra.gmra.mrb[28].mxu1 %vm306_vm2, %v3002_v2 }
 0x94f   :  { %2423 = vmatprep.mubr.msk.bf16.mxu1 %vm2647_vm0, %v2646_v1 }
 0x950   :  { %2418 = vmatmul.mubr.msk.bf16.vlgmr.msra.gmra.mrb[32].mxu0 %vm306_vm2, %v3004_v7 }
 0x951   :  { %2429 = vmatprep.mubr.msk.bf16.mxu0 %vm2647_vm0, %v2646_v1 }
 0x955   :  { %v2407_v51 = vpop.f32.mrb[28].mxu0 }
 0x956   :  { %v1086_v9 = vpop.f32.mrb[29].mxu0  ;;  %v1182_v10 = vpack.c.bf16 %v2407_v51, %v2407_v51 }
 0x957   :  { %v2408_v12 = vpop.f32.mrb[30].mxu0 }
 0x958   :  { %v1089_v13 = vpop.f32.mrb[31].mxu0  ;;  %v1240_v17 = vrot.slane %v1182_v10, %v2948_v8 }
 0x959   :  { %v1181_v14 = vpack.c.bf16 %v1089_v13, %v1086_v9  ;;  %v2203_v16 = vpack.c.bf16 %v1089_v13, %v1089_v13 }
 0x95a   :  { %v1248_v15 = vrot.slane %v1240_v17, %v2948_v8  ;;  %v1241_v25 = vcombine.high %v1240_v17, %v1240_v17 }
 0x95b   :  { %v1199_v18 = vrot.slane %v2203_v16, %v2948_v8  ;;  %v1192_v20 = vrot.slane %v1181_v14, %v2948_v8 }
 0x95c   :  { %v1255_v30 = vrot.slane %v1241_v25, %v2948_v8 }
 0x95d   :  { %v1201_v11 = vcombine.high %v1199_v18, %v1199_v18  ;;  %v1200_v21 = vcombine.high %v1192_v20, %v1192_v20  ;;  %v1208_v22 = vrot.slane %v1192_v20, %v2948_v8  ;;  %v1215_v23 = vrot.slane %v1199_v18, %v2948_v8 }
 0x95e   :  { %v1559_v37 = vrot.slane %v1255_v30, %v2948_v8 }
 0x95f   :  { %v1229_v4 = vrot.slane %v1201_v11, %v2948_v8  ;;  %v1222_v24 = vrot.slane %v1200_v21, %v2948_v8  ;;  %v1231_v27 = vcombine.high %v1215_v23, %v1215_v23  ;;  %v1473_v35 = vrot.slane %v1215_v23, %v2948_v8 }
 0x960   :  { %v1574_v43 = vrot.slane %v1559_v37, %v2948_v8 }
 0x961   :  { %v1233_v5 = vcombine.high %v1229_v4, %v1229_v4  ;;  %v1451_v28 = vcombine.low %v1208_v22, %v1222_v24  ;;  %v2207_v29 = vcombine.high %v1208_v22, %v1222_v24  ;;  %v1537_v34 = vcombine.low %v1229_v4, %v1231_v27 }
 0x962   :  { %v1488_v36 = vrot.slane %v1473_v35, %v2948_v8 }
 0x963   :  { %v1538_v19 = vcombine.low %v1233_v5, %v1248_v15  ;;  %v1459_v32 = vrot.slane %v1451_v28, %v2948_v8  ;;  %v1466_v33 = vrot.slane %v2207_v29, %v2948_v8  ;;  %v1545_v39 = vrot.slane %v1537_v34, %v2948_v8 }
 0x965   :  { %v1474_v38 = vcombine.low %v1459_v32, %v1466_v33  ;;  %v1552_v40 = vrot.slane %v1538_v19, %v2948_v8 }
 0x967   :  { %v1481_v41 = vrot.slane %v1474_v38, %v2948_v8  ;;  %v1560_v42 = vcombine.low %v1545_v39, %v1552_v40 }
 0x969   :  { %v3032_v44 = vcombine.low %v1481_v41, %v1488_v36  ;;  %v1567_v45 = vrot.slane %v1560_v42, %v2948_v8 }
 0x96b   :  { %v1495_v47 = vsel %vm1493_vm6, %v3032_v44, 0  ;;  %v3037_v48 = vcombine.low %v1567_v45, %v1574_v43 }
 0x96c   :  { %2422 = vmatpush3.bf16.msra.mxu1 %v1495_v47 }
 0x96d   :  { %v1580_v49 = vsel %vm1493_vm6, %v3037_v48, 0  ;;  %2433 = vmatprep.subr.bf16.mxu1 %v2646_v1 }
 0x96e   :  { %2428 = vmatpush3.bf16.msra.mxu0 %v1580_v49 }
 0x96f   :  { %2439 = vmatprep.subr.bf16.mxu0 %v2646_v1 }
 0xa21   :  { %v1335_v50 = vpop.f32.mrb[28].mxu1 }
 0xa22   :  { %v2413_v26 = vpop.f32.mrb[29].mxu1  ;;  %v1427_v53 = vsel %vm1426_vm7, %v1335_v50, -inf }
 0xa23   :  { %1428 = vmax.xlane.f32.xlu1 %v1427_v53  ;;  %v1338_v8 = vpop.f32.mrb[30].mxu1  ;;  %v1420_v54 = vpop.f32.mrb[32].mxu0 }
 0xa24   :  { %v2414_v56 = vpop.f32.mrb[31].mxu1  ;;  %v2419_v60 = vpop.f32.mrb[33].mxu0  ;;  %v1430_v61 = vsel %vm1426_vm7, %v1420_v54, -inf }
 0xa25   :  { %1431 = vmax.xlane.f32.xlu0 %v1430_v61  ;;  %v1423_v55 = vpop.f32.mrb[34].mxu0 }
 0xa26   :  { %v2420_v57 = vpop.f32.mrb[35].mxu0 }
 0xa34   :  { %1624 = vrot.lane.b32.xlu1 %v2968_v31, %s2648_s5 }
 0xab0   :  { %v1429_v52 = vpop.xlane.xlu1 %1428 }
 0xab1   :  { %v1433_v62 = vsub.f32 %v1335_v50, %v1429_v52 }
 0xab2   :  { %v1432_v63 = vpop.xlane.xlu0 %1431 }
 0xab3   :  { %v1435_v0 = vmul.f32 1.442695, %v1433_v62  ;;  %v1434_v3 = vsub.f32 %v1420_v54, %v1432_v63 }
 0xab4   :  { %v1625_v31 = vpop.permute.xlu1 %1624 }
 0xab5   :  { %2552 = vpow2.f32 %v1435_v0  ;;  %v1437_v6 = vmul.f32 1.442695, %v1434_v3  ;;  %v2524_v0 = vld [vmem:[%s3203_s10] sm:$0xff]   ;;  %v2525_v3 = vld [vmem:[%s3203_s10 + $0x8] sm:$0xff]  }
 0xab7   :  { %2554 = vpow2.f32 %v1437_v6 }
 0xabf   :  { %v2553_v51 = vpop.eup %2552 }
 0xac0   :  { %v1439_v9 = vsel %vm1426_vm7, %v2553_v51, 0.0 }
 0xac1   :  { %v2555_v10 = vpop.eup %2554  ;;  %1440 = vadd.xlane.f32.xlu1 %v1439_v9 }
 0xac2   :  { %v1442_v12 = vsel %vm1426_vm7, %v2555_v10, 0.0 }
 0xac3   :  { %1443 = vadd.xlane.f32.xlu0 %v1442_v12 }
 0xad2   :  { %1622 = vrot.lane.b32.xlu1 %v3002_v2, %s2648_s5  ;;  %v1630_v2 = vsel %vm306_vm2, %v1625_v31, 0 }
 0xad6   :  { %1672 = vrot.lane.b32.xlu1 %v3004_v7, %s2648_s5 }
 0xad9   :  { %1674 = vrot.lane.b32.xlu0 %v2973_v46, %s2648_s5 }
 0xb4e   :  { %v1441_v13 = vpop.xlane.xlu1 %1440 }
 0xb4f   :  { %2556 = vrcp.f32 %v1441_v13 }
 0xb50   :  { %v1444_v14 = vpop.xlane.xlu0 %1443 }
 0xb51   :  { %2558 = vrcp.f32 %v1444_v14 }
 0xb52   :  { %v1623_v5 = vpop.permute.xlu1 %1622 }
 0xb54   :  { %v1675_v4 = vpop.permute.xlu0 %1674 }
 0xb55   :  { %v1680_v7 = vsel %vm306_vm2, %v1675_v4, 0 }
 0xb56   :  { %v1673_v19 = vpop.permute.xlu1 %1672 }
 0xb59   :  { %v2557_v16 = vpop.eup %2556 }
 0xb5a   :  { %v1446_v17 = vmul.f32 %v2557_v16, %v2553_v51 }
 0xb5b   :  { %v2559_v18 = vpop.eup %2558 }
 0xb5c   :  { %1842 = vst.msk [vmem:[#allocation6] sm:$0xff] %vm1426_vm7, %v1446_v17  ;;  %v1448_v11 = vmul.f32 %v2559_v18, %v2555_v10  ;;  %v1449_v15 = vpack.c.bf16 %v1446_v17, %v1446_v17 }
 0xb5e   :  { %1844 = vst.msk [vmem:[#allocation6 + $0x10] sm:$0xff] %vm1426_vm7, %v1448_v11  ;;  %2424 = vmatmul.mubr.msk.bf16.vlgmr.msra.gmra.mrb[32].mxu1 %vm1426_vm7, %v1449_v15  ;;  %v1450_v46 = vpack.c.bf16 %v1448_v11, %v1448_v11 }
 0xb5f   :  { %2434 = vmatpush3.bf16.xpose.msra.mxu1 %v1630_v2  ;;  %2435 = vmatprep.mubr.msk.bf16.mxu1 %vm2647_vm0, %v2646_v1 }
 0xb60   :  { %2430 = vmatmul.mubr.msk.bf16.vlgmr.msra.gmra.mrb[36].mxu0 %vm1426_vm7, %v1450_v46  ;;  %2445 = vmatprep.subr.bf16.mxu1 %v2646_v1 }
 0xb61   :  { %2440 = vmatpush3.bf16.xpose.msra.mxu0 %v1680_v7  ;;  %2441 = vmatprep.mubr.msk.bf16.mxu0 %vm2647_vm0, %v2646_v1 }
 0xb62   :  { %2451 = vmatprep.subr.bf16.mxu0 %v2646_v1 }
 0xb66   :  { %2436 = vmatmul.mubr.msk.bf16.vlgmr.msra.gmra.mrb[36].mxu1 %vm306_vm2, %v1623_v5 }
 0xb67   :  { %2447 = vmatprep.mubr.msk.bf16.mxu1 %vm2647_vm0, %v2646_v1 }
 0xb68   :  { %2442 = vmatmul.mubr.msk.bf16.vlgmr.msra.gmra.mrb[40].mxu0 %vm306_vm2, %v1673_v19 }
 0xb69   :  { %2453 = vmatprep.mubr.msk.bf16.mxu0 %vm2647_vm0, %v2646_v1 }
 0xc31   :  { %v3073_v20 = vpop.f32.mrb[32].mxu1 }
 0xc32   :  { %v2425_v21 = vpop.f32.mrb[33].mxu1 }
 0xc33   :  { %v1534_v22 = vpop.f32.mrb[34].mxu1  ;;  %v3075_v23 = vpop.f32.mrb[36].mxu0 }
 0xc34   :  { %v2426_v24 = vpop.f32.mrb[35].mxu1  ;;  %v2431_v25 = vpop.f32.mrb[37].mxu0 }
 0xc35   :  { %v1619_v27 = vpop.f32.mrb[38].mxu0 }
 0xc36   :  { %v2432_v28 = vpop.f32.mrb[39].mxu0 }
 0xc39   :  { %v1666_v29 = vpop.f32.mrb[36].mxu1 }
 0xc3a   :  { %v2437_v30 = vpop.f32.mrb[37].mxu1  ;;  %v1722_v32 = vsel %vm1426_vm7, %v1666_v29, -inf }
 0xc3b   :  { %v1716_v33 = vpop.f32.mrb[40].mxu0  ;;  %1723 = vmax.xlane.f32.xlu1 %v1722_v32  ;;  %v1669_v34 = vpop.f32.mrb[38].mxu1 }
 0xc3c   :  { %v2438_v35 = vpop.f32.mrb[39].mxu1  ;;  %v2443_v37 = vpop.f32.mrb[41].mxu0  ;;  %v1725_v38 = vsel %vm1426_vm7, %v1716_v33, -inf  ;;  %v2526_v34 = vld [vmem:[%s3204_s11] sm:$0xff]  }
 0xc3d   :  { %1726 = vmax.xlane.f32.xlu0 %v1725_v38  ;;  %v1719_v39 = vpop.f32.mrb[42].mxu0  ;;  %v2527_v35 = vld [vmem:[%s3204_s11 + $0x8] sm:$0xff]   ;;  %v2528_v37 = vld [vmem:[%s3205_s12] sm:$0xff]  }
 0xc3e   :  { %v2444_v40 = vpop.f32.mrb[43].mxu0  ;;  %v2529_v38 = vld [vmem:[%s3205_s12 + $0x8] sm:$0xff]  }
 0xc4c   :  { %1746 = vrot.lane.b32.xlu1 %v3032_v44, %s2648_s5 }
 0xcc8   :  { %v1724_v36 = vpop.xlane.xlu1 %1723 }
 0xcc9   :  { %v1728_v41 = vsub.f32 %v1666_v29, %v1724_v36 }
 0xcca   :  { %v1727_v42 = vpop.xlane.xlu0 %1726 }
 0xccb   :  { %v1730_v43 = vmul.f32 1.442695, %v1728_v41  ;;  %v1729_v45 = vsub.f32 %v1716_v33, %v1727_v42 }
 0xccc   :  { %v1747_v47 = vpop.permute.xlu1 %1746 }
 0xccd   :  { %2560 = vpow2.f32 %v1730_v43  ;;  %v1732_v49 = vmul.f32 1.442695, %v1729_v45  ;;  %v1752_v50 = vsel %vm1493_vm6, %v1747_v47, 0 }
 0xcce   :  { %2446 = vmatpush3.bf16.msra.mxu1 %v1752_v50 }
 0xccf   :  { %2562 = vpow2.f32 %v1732_v49  ;;  %2457 = vmatprep.subr.bf16.mxu1 %v2646_v1 }
 0xcd7   :  { %v2561_v26 = vpop.eup %2560 }
 0xcd8   :  { %v1734_v53 = vsel %vm1426_vm7, %v2561_v26, 0.0 }
 0xcd9   :  { %v2563_v8 = vpop.eup %2562  ;;  %1735 = vadd.xlane.f32.xlu0 %v1734_v53  ;;  %v2530_v53 = vld [vmem:[%s3205_s12 + $0x10] sm:$0xff]  }
 0xcda   :  { %v1737_v44 = vsel %vm1426_vm7, %v2563_v8, 0.0 }
 0xcdd   :  { %1738 = vadd.xlane.f32.xlu0 %v1737_v44 }
 0xcf3   :  { %1794 = vrot.lane.b32.xlu0 %v3037_v48, %s2648_s5 }
 0xd66   :  { %v1736_v54 = vpop.xlane.xlu0 %1735 }
 0xd67   :  { %2564 = vrcp.f32 %v1736_v54 }
 0xd6a   :  { %v1739_v56 = vpop.xlane.xlu0 %1738 }
 0xd6b   :  { %2566 = vrcp.f32 %v1739_v56 }
 0xd6e   :  { %v1795_v60 = vpop.permute.xlu0 %1794 }
 0xd6f   :  { %v1800_v61 = vsel %vm1493_vm6, %v1795_v60, 0 }
 0xd70   :  { %2452 = vmatpush3.bf16.msra.mxu0 %v1800_v61 }
 0xd71   :  { %v2565_v55 = vpop.eup %2564  ;;  %2465 = vmatprep.subr.bf16.mxu0 %v2646_v1 }
 0xd72   :  { %v1741_v57 = vmul.f32 %v2565_v55, %v2561_v26 }
 0xd74   :  { %1843 = vst.msk [vmem:[#allocation6 + $0x8] sm:$0xff] %vm1426_vm7, %v1741_v57  ;;  %v1744_v52 = vpack.c.bf16 %v1741_v57, %v1741_v57 }
 0xd75   :  { %v2567_v62 = vpop.eup %2566 }
 0xd76   :  { %v1743_v63 = vmul.f32 %v2567_v62, %v2563_v8  ;;  %2448 = vmatmul.mubr.msk.bf16.vlgmr.msra.gmra.mrb[40].mxu1 %vm1426_vm7, %v1744_v52  ;;  %v2531_v8 = vld [vmem:[%s3205_s12 + $0x18] sm:$0xff]   ;;  %s2652_s12 = smov [#allocation4]  }
 0xd77   :  { %2461 = vmatprep.mubr.msk.bf16.mxu1 %vm2647_vm0, %v2646_v1  ;;  %2458 = vmatpush3.bf16.msra.mxu1 %v2524_v0  ;;  %s2129_s18 = sshll.u32 %s2652_s12, 4  ;;  %s2130_s18 = int_to_ptr.vmem [resolvable:$true] %s2129_s18 }
 0xd78   :  { %1845 = vst.msk [vmem:[#allocation6 + $0x18] sm:$0xff] %vm1426_vm7, %v1743_v63  ;;  %v1745_v48 = vpack.c.bf16 %v1743_v63, %v1743_v63  ;;  %2459 = vmatprep.subr.bf16.mxu1 %v2646_v1  ;;  %s2576_s1 = scalar_lea.vmem %s2130_s18, 512  ;;  %p2581_p1 = scmp.lt.s32.totalorder %s2130_s18, %s2130_s18 }
 0xd79   :  { %p2577_p0 = scmp.ne.s32.totalorder %s2130_s18, %s2576_s1  ;;  %p2582_p2 = scmp.lt.s32.totalorder %s2576_s1, %s2576_s1 }
 0xd7a   :  { %2454 = vmatmul.mubr.msk.bf16.vlgmr.msra.gmra.mrb[44].mxu0 %vm1426_vm7, %v1745_v48 }
 0xd7b   :  { %2469 = vmatprep.mubr.msk.bf16.mxu0 %vm2647_vm0, %v2646_v1  ;;  %2460 = vmatpush3.bf16.msra.mxu1 %v2525_v3  ;;  %p2583_p3 = por %p2582_p2, %p2581_p1 }
 0xd7c   :  { %2473 = vmatprep.subr.bf16.mxu1 %v2646_v1  ;;  %2466 = vmatpush3.bf16.msra.mxu0 %v2526_v34 }
 0xd7d   :  { %2467 = vmatprep.subr.bf16.mxu0 %v2646_v1  ;;  %p2584_p4 = pnand %p2583_p3, %p2577_p0 }
 0xd80   :  { %2468 = vmatpush3.bf16.msra.mxu0 %v2527_v35 }
 0xe49   :  { %v1788_v6 = vpop.f32.mrb[40].mxu1 }
 0xe4a   :  { %v2449_v51 = vpop.f32.mrb[41].mxu1 }
 0xe4b   :  { %v1791_v9 = vpop.f32.mrb[42].mxu1 }
 0xe4c   :  { %v2450_v10 = vpop.f32.mrb[43].mxu1 }
 0xe4d   :  { %v1836_v12 = vpop.f32.mrb[44].mxu0 }
 0xe4e   :  { %v2501_v31 = vpack.i.bf16 %v1836_v12, %v1788_v6  ;;  %v2455_v13 = vpop.f32.mrb[45].mxu0 }
 0xe4f   :  { %v1839_v14 = vpop.f32.mrb[46].mxu0 }
 0xe50   :  { %v2456_v16 = vpop.f32.mrb[47].mxu0  ;;  %2502 = vrot.lane.b32.xlu1 %v2501_v31, %s2649_s23 }
 0xec2   :  { %v2503_v17 = vpop.permute.xlu1 %2502 }
 0xec3   :  { %v2505_v18 = vunpack.i.h.bf16 %v2503_v17  ;;  %v2504_v11 = vunpack.i.l.bf16 %v2503_v17 }
 0xec5   :  { %v1855_v15 = vsel %vm306_vm2, %v3075_v23, %v2505_v18  ;;  %v1854_v4 = vsel %vm306_vm2, %v3073_v20, %v2504_v11 }
 0xec6   :  { %v1856_v2 = vpack.c.bf16 %v1855_v15, %v1854_v4 }
 0xec8   :  { %2462 = vmatmul.mubr.msk.bf16.vlgmr.msra.gmra.mrb[44].mxu1 %vm127_vm1, %v1856_v2 }
 0xec9   :  { %2481 = vmatprep.mubr.msk.bf16.mxu1 %vm2647_vm0, %v2646_v1  ;;  %2474 = vmatpush3.bf16.msra.mxu1 %v2528_v37 }
 0xeca   :  { %2475 = vmatprep.subr.bf16.mxu1 %v2646_v1 }
 0xecd   :  { %2476 = vmatpush3.bf16.msra.mxu1 %v2529_v38 }
 0xece   :  { %2477 = vmatprep.subr.bf16.mxu1 %v2646_v1 }
 0xed1   :  { %2478 = vmatpush3.bf16.msra.mxu1 %v2530_v53 }
 0xed2   :  { %2479 = vmatprep.subr.bf16.mxu1 %v2646_v1 }
 0xed5   :  { %2480 = vmatpush3.bf16.msra.mxu1 %v2531_v8 }
 0xf9b   :  { %v1910_v46 = vpop.f32.mrb[44].mxu1 }
 0xf9c   :  { %v1911_v7 = vadd.f32 %v1910_v46, %v2977_v58  ;;  %v2463_v5 = vpop.f32.mrb[45].mxu1 }
 0xf9d   :  { %v1913_v19 = vpop.f32.mrb[46].mxu1 }
 0xf9e   :  { %v1914_v21 = vadd.f32 %v1913_v19, %v2980_v59  ;;  %v2464_v22 = vpop.f32.mrb[47].mxu1  ;;  %v1917_v24 = vsel %vm127_vm1, %v1911_v7, 0.0 }
 0xf9f   :  { %1918 = vadd.xlane.f32.xlu1 %v1917_v24 }
 0xfa0   :  { %v1920_v23 = vsel %vm127_vm1, %v1914_v21, 0.0 }
 0xfa1   :  { %1921 = vadd.xlane.f32.xlu0 %v1920_v23 }
0x102c   :  { %v1919_v20 = vpop.xlane.xlu1 %1918 }
0x102d   :  { %v1923_v25 = vmul.f32 0.03125, %v1919_v20 }
0x102e   :  { %v1922_v27 = vpop.xlane.xlu0 %1921 }
0x102f   :  { %v1925_v28 = vsub.f32 %v1911_v7, %v1923_v25  ;;  %v1924_v29 = vmul.f32 0.03125, %v1922_v27 }
0x1031   :  { %v1926_v30 = vsub.f32 %v1914_v21, %v1924_v29  ;;  %v1927_v32 = vmul.f32 %v1925_v28, %v1925_v28 }
0x1033   :  { %v1929_v58 = vsel %vm127_vm1, %v1927_v32, 0.0  ;;  %v1928_v33 = vmul.f32 %v1926_v30, %v1926_v30 }
0x1034   :  { %1930 = vadd.xlane.f32.xlu0 %v1929_v58 }
0x1035   :  { %v1932_v59 = vsel %vm127_vm1, %v1928_v33, 0.0 }
0x1036   :  { %1933 = vadd.xlane.f32.xlu1 %v1932_v59 }
0x10c1   :  { %v1931_v39 = vpop.xlane.xlu0 %1930 }
0x10c2   :  { %v1935_v40 = vmul.f32 0.03125, %v1931_v39 }
0x10c3   :  { %v1934_v36 = vpop.xlane.xlu1 %1933 }
0x10c4   :  { %v1937_v41 = vadd.f32 1e-05, %v1935_v40  ;;  %v1936_v42 = vmul.f32 0.03125, %v1934_v36 }
0x10c6   :  { %2568 = vrsqrt.f32 %v1937_v41  ;;  %v1938_v43 = vadd.f32 1e-05, %v1936_v42 }
0x10c8   :  { %2570 = vrsqrt.f32 %v1938_v43 }
0x10d0   :  { %v2569_v45 = vpop.eup %2568 }
0x10d1   :  { %v1941_v49 = vmul.f32 %v2569_v45, %v1925_v28 }
0x10d2   :  { %v2571_v47 = vpop.eup %2570 }
0x10d3   :  { %v1942_v50 = vmul.f32 %v2571_v47, %v1926_v30 }
0x10d5   :  { %v1943_v26 = vpack.c.bf16 %v1942_v50, %v1941_v49 }
0x10d7   :  { %2470 = vmatmul.mubr.msk.bf16.vlgmr.msra.gmra.mrb[48].mxu0 %vm127_vm1, %v1943_v26 }
0x11aa   :  { %v1997_v44 = vpop.f32.mrb[48].mxu0 }
0x11ab   :  { %v2471_v54 = vpop.f32.mrb[49].mxu0  ;;  %v2004_v60 = vmax.f32 %v1997_v44, 0.0 }
0x11ac   :  { %v2000_v56 = vpop.f32.mrb[50].mxu0 }
0x11ad   :  { %v2005_v61 = vmax.f32 %v2000_v56, 0.0  ;;  %v2472_v55 = vpop.f32.mrb[51].mxu0 }
0x11af   :  { %v2006_v57 = vpack.c.bf16 %v2005_v61, %v2004_v60 }
0x11b1   :  { %2482 = vmatmul.mubr.msk.bf16.vlgmr.msra.gmra.mrb[48].mxu1 %vm2039_vm8, %v2006_v57 }
0x1284   :  { %v2077_v52 = vpop.f32.mrb[48].mxu1 }
0x1285   :  { %v2078_v62 = vadd.f32 %v2077_v52, %v1941_v49  ;;  %v2483_v63 = vpop.f32.mrb[49].mxu1 }
0x1286   :  { %v2080_v48 = vpop.f32.mrb[50].mxu1 }
0x1287   :  { %v2081_v0 = vadd.f32 %v2080_v48, %v1942_v50  ;;  %v2484_v1 = vpop.f32.mrb[51].mxu1  ;;  %v2084_v3 = vsel %vm127_vm1, %v2078_v62, 0.0 }
0x1288   :  { %2085 = vadd.xlane.f32.xlu0 %v2084_v3 }
0x1289   :  { %v2087_v6 = vsel %vm127_vm1, %v2081_v0, 0.0 }
0x128a   :  { %2088 = vadd.xlane.f32.xlu1 %v2087_v6 }
0x1315   :  { %v2086_v51 = vpop.xlane.xlu0 %2085 }
0x1316   :  { %v2090_v9 = vmul.f32 0.03125, %v2086_v51 }
0x1317   :  { %v2089_v10 = vpop.xlane.xlu1 %2088 }
0x1318   :  { %v2092_v12 = vsub.f32 %v2078_v62, %v2090_v9  ;;  %v2091_v31 = vmul.f32 0.03125, %v2089_v10 }
0x131a   :  { %v2093_v13 = vsub.f32 %v2081_v0, %v2091_v31  ;;  %v2094_v14 = vmul.f32 %v2092_v12, %v2092_v12 }
0x131c   :  { %v2096_v16 = vsel %vm127_vm1, %v2094_v14, 0.0  ;;  %v2095_v17 = vmul.f32 %v2093_v13, %v2093_v13 }
0x131d   :  { %2097 = vadd.xlane.f32.xlu0 %v2096_v16 }
0x131e   :  { %v2099_v18 = vsel %vm127_vm1, %v2095_v17, 0.0 }
0x131f   :  { %2100 = vadd.xlane.f32.xlu1 %v2099_v18 }
0x1320   :  { %2587 = shalt.err (!%p2584_p4)
}
0x1321   :  { %s2588_s2 = scalar_lea.hbm %s3207_s14, 512 }
0x1322   :  { %p2589_p5 = scmp.ne.s32.totalorder %s3207_s14, %s2588_s2  ;;  %p2592_p6 = scmp.lt.u32.totalorder %s2588_s2, %s3207_s14 }
0x1324   :  { %p2594_p7 = pnand %p2592_p6, %p2589_p5 }
0x1326   :  { %2597 = shalt.err (!%p2594_p7)
}
0x1327   :  { %s2653_s6 = smov 128   ;;  %s2654_s24 = smov 8  }
0x1328   :  { %2135 = dma.vmem_to_hbm [thread:$0]  %s2130_s18, 512, %s3207_s14, [#allocation5], %s2653_s6, %s2653_s6, %s2654_s24  }
0x1329   :  { %s2655_s25 = smov [#allocation6]  }
0x132a   :  { %s2141_s26 = sshll.u32 %s2655_s25, 4  ;;  %s2142_s26 = int_to_ptr.vmem [resolvable:$true] %s2141_s26 }
0x132b   :  { %s2598_s10 = scalar_lea.vmem %s2142_s26, 512  ;;  %p2603_p9 = scmp.lt.s32.totalorder %s2142_s26, %s2142_s26 }
0x132c   :  { %p2599_p8 = scmp.ne.s32.totalorder %s2142_s26, %s2598_s10  ;;  %p2604_p10 = scmp.lt.s32.totalorder %s2598_s10, %s2598_s10 }
0x132e   :  { %p2605_p11 = por %p2604_p10, %p2603_p9 }
0x1330   :  { %p2606_p12 = pnand %p2605_p11, %p2599_p8 }
0x1332   :  { %2609 = shalt.err (!%p2606_p12)
}
0x1333   :  { %s2610_s4 = scalar_lea.hbm %s3208_s15, 512 }
0x1334   :  { %p2611_p13 = scmp.ne.s32.totalorder %s3208_s15, %s2610_s4  ;;  %p2614_p0 = scmp.lt.u32.totalorder %s2610_s4, %s3208_s15 }
0x1336   :  { %p2616_p1 = pnand %p2614_p0, %p2611_p13 }
0x1338   :  { %2619 = shalt.err (!%p2616_p1)
}
0x1339   :  { %2147 = dma.vmem_to_hbm [thread:$0]  %s2142_s26, 512, %s3208_s15, [#allocation5], %s2653_s6, %s2653_s6, %s2654_s24  }
0x133a   :  { %s2656_s3 = smov [#allocation2]  }
0x133b   :  { %s2117_s16 = sshll.u32 %s2656_s3, 4  ;;  %s2118_s16 = int_to_ptr.vmem [resolvable:$true] %s2117_s16 }
0x133c   :  { %s2620_s15 = scalar_lea.vmem %s2118_s16, 256  ;;  %p2625_p3 = scmp.lt.s32.totalorder %s2118_s16, %s2118_s16 }
0x133d   :  { %p2621_p2 = scmp.ne.s32.totalorder %s2118_s16, %s2620_s15  ;;  %p2626_p4 = scmp.lt.s32.totalorder %s2620_s15, %s2620_s15 }
0x133f   :  { %p2627_p5 = por %p2626_p4, %p2625_p3 }
0x1341   :  { %p2628_p6 = pnand %p2627_p5, %p2621_p2 }
0x13aa   :  { %v2098_v11 = vpop.xlane.xlu0 %2097 }
0x13ab   :  { %v2102_v15 = vmul.f32 0.03125, %v2098_v11 }
0x13ac   :  { %v2101_v4 = vpop.xlane.xlu1 %2100 }
0x13ad   :  { %v2104_v2 = vadd.f32 1e-05, %v2102_v15  ;;  %v2103_v46 = vmul.f32 0.03125, %v2101_v4 }
0x13af   :  { %2572 = vrsqrt.f32 %v2104_v2  ;;  %v2105_v7 = vadd.f32 1e-05, %v2103_v46 }
0x13b1   :  { %2574 = vrsqrt.f32 %v2105_v7 }
0x13b9   :  { %v2573_v5 = vpop.eup %2572 }
0x13ba   :  { %v2108_v19 = vmul.f32 %v2573_v5, %v2092_v12 }
0x13bb   :  { %v2575_v21 = vpop.eup %2574 }
0x13bc   :  { %v2109_v22 = vmul.f32 %v2575_v21, %v2093_v13  ;;  %2110 = vst.msk [vmem:[#allocation2] sm:$0xff] %vm127_vm1, %v2108_v19 }
0x13be   :  { %2111 = vst.msk [vmem:[#allocation2 + $0x8] sm:$0xff] %vm127_vm1, %v2109_v22 }
0x13bf   :  { %2631 = shalt.err (!%p2628_p6)
}
0x13c0   :  { %s2632_s18 = scalar_lea.hbm %s3206_s13, 256 }
0x13c1   :  { %p2633_p7 = scmp.ne.s32.totalorder %s3206_s13, %s2632_s18  ;;  %p2636_p8 = scmp.lt.u32.totalorder %s2632_s18, %s3206_s13 }
0x13c3   :  { %p2638_p9 = pnand %p2636_p8, %p2633_p7 }
0x13c5   :  { %2641 = shalt.err (!%p2638_p9)
}
0x13c6   :  { %2123 = dma.vmem_to_hbm [thread:$0]  %s2118_s16, 256, %s3206_s13, [#allocation3], %s2653_s6, %s2653_s6, %s2654_s24  }
0x13c7   :  { %2642 = dma.done.wait [#allocation3], 256  }
0x13c8   :  { %2643 = vsyncadd [#allocation3], 4294967040 }
0x13c9   :  { %2644 = dma.done.wait [#allocation5], 1024  }
0x13ca   :  { %2645 = vsyncadd [#allocation5], 4294966272 }
0x13cb   :  { %2157 = vsyncpa [#allocation3], 1 }
0x13cc   :  { %2158 = vsyncpa [#allocation5], 1 }

</bundles_post_ra>
